<compile_context>
chip_gen: v6e
topology: v6e:2x2x1
jax: 0.10.0
libtpu: 0.0.40
codegen_flags: <defaults>
</compile_context>

<pallas_src>
import functools

import jax
import jax.numpy as jnp
from jax.experimental import pallas as pl
from jax.experimental.pallas import tpu as pltpu

# Whole-array-in-VMEM spec (all operands here are KB-scale).
VMEM = pl.BlockSpec(memory_space=pltpu.MemorySpace.VMEM)


# ----------------------------------------------------------------------------
# Kernel 1: fused preamble (AtomEncoder + RBF proj + graph init + v fixup)
# ----------------------------------------------------------------------------
def _encode_kernel(x_ref, we_ref, be_ref, el_ref, mu_ref, wr_ref, br_ref,
                   ev_ref, src_ref, rnd_ref,
                   s_ref, ea_ref, unit_ref, v_ref, invc_ref,
                   *, beta, cutoff):
    # --- AtomEncoder: s = silu(x @ W + b) ---
    y = jnp.dot(x_ref[...], we_ref[...], preferred_element_type=jnp.float32)
    y = y + be_ref[...]
    s_ref[...] = y * jax.nn.sigmoid(y)

    # --- RBFEncoder: Gaussian RBF * cosine cutoff, fused with linear proj ---
    dlen = el_ref[...]                                   # (E, 1)
    diff = dlen - mu_ref[...]                            # (E, K)
    env = 0.5 * (jnp.cos(jnp.pi * jnp.clip(dlen / cutoff, 0.0, 1.0)) + 1.0)
    rbf = jnp.exp(-beta * diff * diff) * env             # stays in vregs
    ea_ref[...] = (jnp.dot(rbf, wr_ref[...], preferred_element_type=jnp.float32)
                   + br_ref[...])

    # --- edge unit vectors, scatter-mean initial v, 1/count, zero-deg fixup ---
    unit = ev_ref[...] / (dlen + 1e-6)                   # (E, 3)
    unit_ref[...] = unit
    n = x_ref.shape[0]
    e = ev_ref.shape[0]
    row = jax.lax.broadcasted_iota(jnp.int32, (n, e), 0)
    sel = (row == src_ref[...]).astype(jnp.float32)      # (N, E), vregs only
    counts = jnp.sum(sel, axis=1, keepdims=True)         # (N, 1)
    inv = pl.reciprocal(jnp.maximum(counts, 1.0), approx=True)
    invc_ref[...] = inv
    v_mean = jnp.dot(sel, unit, preferred_element_type=jnp.float32) * inv
    vnorm = jnp.sqrt(jnp.sum(v_mean * v_mean, axis=-1, keepdims=True))
    rnd = rnd_ref[...]
    rnd_n = rnd / jnp.maximum(jnp.sqrt(jnp.sum(rnd * rnd, axis=-1, keepdims=True)),
                              1e-6)
    v_ref[...] = jnp.where(vnorm == 0.0, rnd_n, v_mean)


def pallas_encode(x, w_e, b_e, edge_len, mu, w_r, b_r, edge_vec, src, rnd,
                  beta, cutoff):
    n, d = x.shape
    e = edge_vec.shape[0]
    k = mu.shape[0]
    out_shape = (
        jax.ShapeDtypeStruct((n, d), jnp.float32),   # s0
        jax.ShapeDtypeStruct((e, d), jnp.float32),   # edge_attr
        jax.ShapeDtypeStruct((e, 3), jnp.float32),   # unit edge vectors
        jax.ShapeDtypeStruct((n, 3), jnp.float32),   # v0 (with zero-deg fixup)
        jax.ShapeDtypeStruct((n, 1), jnp.float32),   # 1 / max(count, 1)
    )
    return pl.pallas_call(
        functools.partial(_encode_kernel, beta=float(beta), cutoff=float(cutoff)),
        out_shape=out_shape,
        in_specs=[VMEM] * 10,
        out_specs=(VMEM,) * 5,
    )(x.astype(jnp.float32), w_e, b_e.reshape(1, d),
      edge_len.reshape(e, 1).astype(jnp.float32), mu.reshape(1, k),
      w_r, b_r.reshape(1, d),
      edge_vec.astype(jnp.float32), src.reshape(1, e).astype(jnp.int32),
      rnd.astype(jnp.float32))


# ----------------------------------------------------------------------------
# Kernel 2: fused layer stack (GNN + SelfAttention) x L with grid=(L,)
# ----------------------------------------------------------------------------
def _layer_stack_kernel(s0_ref, v0_ref, ea_ref, unit_ref, dst_ref, src_ref,
                        invc_ref,
                        wm_ref, bm_ref, wu_ref, bu_ref, wg_ref, bg_ref,
                        wqkv_ref, bqkv_ref, wo_ref, bo_ref,
                        s_out_ref, v_out_ref,
                        s_scr, v_scr, sel_dst_scr, sel_src_scr,
                        *, n_heads, mean_aggr):
    l = pl.program_id(0)
    n, d = s_scr.shape
    e = ea_ref.shape[0]

    # Init carried state and one-hot selectors ONCE (layer 0); all persist in
    # VMEM scratch across the "arbitrary" layer grid axis.
    @pl.when(l == 0)
    def _():
        s_scr[...] = s0_ref[...]
        v_scr[...] = v0_ref[...]
        col = jax.lax.broadcasted_iota(jnp.int32, (e, n), 1)
        sel_dst_scr[...] = (col == dst_ref[...]).astype(jnp.float32)   # (E, N)
        row = jax.lax.broadcasted_iota(jnp.int32, (n, e), 0)
        sel_src_scr[...] = (row == src_ref[...]).astype(jnp.float32)   # (N, E)

    s = s_scr[...]                                                     # (N, d)
    ea = ea_ref[...]                                                   # (E, d)
    unit = unit_ref[...]                                               # (E, 3)

    # ---- UnifiedEquivariantGNN layer (gather + message + gate + scatter
    #      + update + residuals), no (E,*) intermediate ever leaves VMEM ----
    s_nb = jnp.dot(sel_dst_scr[...], s, preferred_element_type=jnp.float32)
    pre = (jnp.dot(s_nb * ea, wm_ref[...], preferred_element_type=jnp.float32)
           + bm_ref[...])
    m = pre * jax.nn.sigmoid(pre)                                      # (E, d)
    g = (jnp.dot(m, wg_ref[...], preferred_element_type=jnp.float32)
         + bg_ref[...])                                                # (E, 1)
    gv = g * unit                                                      # (E, 3)
    sel_src = sel_src_scr[...]
    agg = jnp.dot(sel_src, m, preferred_element_type=jnp.float32)      # (N, d)
    dv = jnp.dot(sel_src, gv, preferred_element_type=jnp.float32)      # (N, 3)
    if mean_aggr:
        inv = invc_ref[...]
        agg = agg * inv
        dv = dv * inv
    s = s + (jnp.dot(agg, wu_ref[...], preferred_element_type=jnp.float32)
             + bu_ref[...])
    v_new = v_scr[...] + dv
    v_scr[...] = v_new
    # dropout is a no-op in eval-mode forward

    # ---- SelfAttention: fused QKV matmul, per-head softmax (static unroll),
    #      per-head output-projection fold, residual add ----
    qkv = (jnp.dot(s, wqkv_ref[...], preferred_element_type=jnp.float32)
           + bqkv_ref[...])                                            # (N, 3d)
    wo = wo_ref[...]                                                   # (d, d)
    hd = d // n_heads
    scale = 1.0 / float(hd) ** 0.5
    proj = jnp.zeros((n, d), jnp.float32)
    # TODO(synk): pack heads along sublanes (block-diagonal mask) once N/d grow;
    # at n_heads=4, N=16 the static unroll is fine.
    for hh in range(n_heads):
        q_h = qkv[:, hh * hd:(hh + 1) * hd]
        k_h = qkv[:, d + hh * hd: d + (hh + 1) * hd]
        v_h = qkv[:, 2 * d + hh * hd: 2 * d + (hh + 1) * hd]
        sc = jax.lax.dot_general(q_h, k_h, (((1,), (1,)), ((), ())),
                                 preferred_element_type=jnp.float32) * scale
        sc = sc - jnp.max(sc, axis=-1, keepdims=True)
        p = jnp.exp(sc)
        p = p * pl.reciprocal(jnp.sum(p, axis=-1, keepdims=True), approx=True)
        o_h = jnp.dot(p, v_h, preferred_element_type=jnp.float32)      # (N, hd)
        proj = proj + jnp.dot(o_h, wo[hh * hd:(hh + 1) * hd, :],
                              preferred_element_type=jnp.float32)
    s = s + proj + bo_ref[...]
    s_scr[...] = s

    # Output blocks map to the same block index every layer -> resident in
    # VMEM; HBM writeback happens once, at the end of the grid.
    s_out_ref[...] = s
    v_out_ref[...] = v_new


def _const_spec(shape):
    nd = len(shape)
    return pl.BlockSpec(shape, lambda l, _nd=nd: (0,) * _nd)


def _layer_spec(shape):
    nd = len(shape)
    return pl.BlockSpec((None,) + shape, lambda l, _nd=nd: (l,) + (0,) * _nd)


def pallas_layer_stack(s0, v0, edge_attr, unit, dst_col, src_row, inv_counts,
                       stacked, n_heads, mean_aggr):
    n, d = s0.shape
    e = edge_attr.shape[0]
    num_layers = stacked["wm"].shape[0]

    in_specs = [
        _const_spec((n, d)),        # s0
        _const_spec((n, 3)),        # v0
        _const_spec((e, d)),        # edge_attr
        _const_spec((e, 3)),        # unit
        _const_spec((e, 1)),        # dst (column form)
        _const_spec((1, e)),        # src (row form)
        _const_spec((n, 1)),        # 1/count
        _layer_spec((d, d)),        # wm
        _layer_spec((1, d)),        # bm
        _layer_spec((d, d)),        # wu
        _layer_spec((1, d)),        # bu
        _layer_spec((d, 1)),        # wg
        _layer_spec((1, 1)),        # bg
        _layer_spec((d, 3 * d)),    # wqkv
        _layer_spec((1, 3 * d)),    # bqkv
        _layer_spec((d, d)),        # wo
        _layer_spec((1, d)),        # bo
    ]
    out_specs = [_const_spec((n, d)), _const_spec((n, 3))]
    out_shape = (jax.ShapeDtypeStruct((n, d), jnp.float32),
                 jax.ShapeDtypeStruct((n, 3), jnp.float32))
    scratch_shapes = [
        pltpu.VMEM((n, d), jnp.float32),    # carried s
        pltpu.VMEM((n, 3), jnp.float32),    # carried v
        pltpu.VMEM((e, n), jnp.float32),    # gather selector (built once)
        pltpu.VMEM((n, e), jnp.float32),    # scatter selector (built once)
    ]
    grid_spec = pltpu.PrefetchScalarGridSpec(
        num_scalar_prefetch=0,
        grid=(num_layers,),
        in_specs=in_specs,
        out_specs=out_specs,
        scratch_shapes=scratch_shapes,
    )
    return pl.pallas_call(
        functools.partial(_layer_stack_kernel, n_heads=n_heads,
                          mean_aggr=mean_aggr),
        out_shape=out_shape,
        grid_spec=grid_spec,
        compiler_params=pltpu.CompilerParams(
            dimension_semantics=("arbitrary",)),
    )(s0, v0, edge_attr, unit, dst_col, src_row, inv_counts,
      stacked["wm"], stacked["bm"], stacked["wu"], stacked["bu"],
      stacked["wg"], stacked["bg"], stacked["wqkv"], stacked["bqkv"],
      stacked["wo"], stacked["bo"])


# ----------------------------------------------------------------------------
# Parameter construction (deterministic, in-script)
# ----------------------------------------------------------------------------
def _lin_params(key, din, dout):
    w = jax.random.normal(key, (din, dout), jnp.float32) * (1.0 / jnp.sqrt(din))
    b = jnp.zeros((dout,), jnp.float32)
    return w, b


def init_params(key, args):
    d = args.d_scalar
    num_layers = args.num_layers
    keys = iter(jax.random.split(key, 8 * num_layers + 4))

    embed = _lin_params(next(keys), d, d)
    rbf_lin = _lin_params(next(keys), args.num_rbf, d)
    rbf_mu = jnp.linspace(0.0, args.cutoff, args.num_rbf).astype(jnp.float32)

    wm, bm, wu, bu, wg, bg, wqkv, bqkv, wo, bo = ([] for _ in range(10))
    for _ in range(num_layers):
        w, b = _lin_params(next(keys), d, d); wm.append(w); bm.append(b.reshape(1, d))
        w, b = _lin_params(next(keys), d, d); wu.append(w); bu.append(b.reshape(1, d))
        w, b = _lin_params(next(keys), d, 1); wg.append(w); bg.append(b.reshape(1, 1))
        wq, bq = _lin_params(next(keys), d, d)
        wk, bk = _lin_params(next(keys), d, d)
        wv, bv = _lin_params(next(keys), d, d)
        wqkv.append(jnp.concatenate([wq, wk, wv], axis=1))            # (d, 3d)
        bqkv.append(jnp.concatenate([bq, bk, bv], axis=0).reshape(1, 3 * d))
        w, b = _lin_params(next(keys), d, d); wo.append(w); bo.append(b.reshape(1, d))

    stacked = {name: jnp.stack(vals) for name, vals in dict(
        wm=wm, bm=bm, wu=wu, bu=bu, wg=wg, bg=bg,
        wqkv=wqkv, bqkv=bqkv, wo=wo, bo=bo).items()}
    return {"embed": embed, "rbf_lin": rbf_lin, "rbf_mu": rbf_mu,
            "stacked": stacked}


# ----------------------------------------------------------------------------
# Forward pass (mirrors CrossModalFT.forward) — exactly 2 pallas_calls total
# ----------------------------------------------------------------------------
def cross_modal_ft_forward(params, x, edge_vec, edge_len, edge_index, args,
                           rng_key):
    n_nodes = x.shape[0]
    e = edge_vec.shape[0]
    src = edge_index[0].astype(jnp.int32)
    dst = edge_index[1].astype(jnp.int32)
    beta = (args.num_rbf / args.cutoff) ** 2
    rnd = jax.random.normal(rng_key, (n_nodes, 3), jnp.float32)

    w_e, b_e = params["embed"]
    w_r, b_r = params["rbf_lin"]

    # Fused preamble: AtomEncoder + RBF proj + unit vecs + scatter-mean v
    # + 1/count + zero-degree-node fixup.
    s0, edge_attr, unit, v0, inv_counts = pallas_encode(
        x, w_e, b_e, edge_len, params["rbf_mu"], w_r, b_r, edge_vec, src, rnd,
        beta, args.cutoff)

    # Fused [GNN + SelfAttention] x L with s/v resident in VMEM.
    s, v = pallas_layer_stack(
        s0, v0, edge_attr, unit,
        dst.reshape(e, 1), src.reshape(1, e), inv_counts,
        params["stacked"], args.num_attn_heads, args.aggr == "mean")
    return s, v


# ----------------------------------------------------------------------------
if __name__ == "__main__":
    class Args:
        num_rbf = 16
        cutoff = 5.0
        aggr = "mean"
        d_scalar = 32
        num_layers = 2
        num_attn_heads = 4
        dropout = 0.0

    args = Args()

    key = jax.random.PRNGKey(0)
    kx, kv, ke, kp, kr = jax.random.split(key, 5)

    N, E = 16, 32
    x = jax.random.normal(kx, (N, args.d_scalar), jnp.float32)
    edge_vec = jax.random.normal(kv, (E, 3), jnp.float32)
    edge_len = jnp.linalg.norm(edge_vec, axis=-1)
    edge_index = jax.random.randint(ke, (2, E), 0, N)

    params = init_params(kp, args)

    @jax.jit
    def run(params, x, edge_vec, edge_len, edge_index, rng_key):
        return cross_modal_ft_forward(params, x, edge_vec, edge_len, edge_index,
                                      args, rng_key)

    s_out, v_out = run(params, x, edge_vec, edge_len, edge_index, kr)
    jax.block_until_ready((s_out, v_out))

    assert s_out.shape == (N, args.d_scalar)
    assert v_out.shape == (N, 3)
    print("KERNEL_OK")
</pallas_src>

<mosaic_0001>
module attributes {stable_mosaic.version = 11 : i64} {
  func.func @_encode_kernel(%arg0: memref<16x32xf32, #tpu.memory_space<vmem>>, %arg1: memref<32x32xf32, #tpu.memory_space<vmem>>, %arg2: memref<1x32xf32, #tpu.memory_space<vmem>>, %arg3: memref<32x1xf32, #tpu.memory_space<vmem>>, %arg4: memref<1x16xf32, #tpu.memory_space<vmem>>, %arg5: memref<16x32xf32, #tpu.memory_space<vmem>>, %arg6: memref<1x32xf32, #tpu.memory_space<vmem>>, %arg7: memref<32x3xf32, #tpu.memory_space<vmem>>, %arg8: memref<1x32xi32, #tpu.memory_space<vmem>>, %arg9: memref<16x3xf32, #tpu.memory_space<vmem>>, %arg10: memref<16x32xf32, #tpu.memory_space<vmem>>, %arg11: memref<32x32xf32, #tpu.memory_space<vmem>>, %arg12: memref<32x3xf32, #tpu.memory_space<vmem>>, %arg13: memref<16x3xf32, #tpu.memory_space<vmem>>, %arg14: memref<16x1xf32, #tpu.memory_space<vmem>>) attributes {dimension_semantics = [], scalar_prefetch = 0 : i64, scratch_operands = 0 : i64, tpu.core_type = #tpu.core_type<tc>} {
    %c0 = arith.constant 0 : index
    %c0_0 = arith.constant 0 : index
    %0 = vector.load %arg0[%c0, %c0_0] : memref<16x32xf32, #tpu.memory_space<vmem>>, vector<16x32xf32>
    %c0_1 = arith.constant 0 : index
    %c0_2 = arith.constant 0 : index
    %1 = vector.load %arg1[%c0_1, %c0_2] : memref<32x32xf32, #tpu.memory_space<vmem>>, vector<32x32xf32>
    %cst = arith.constant dense<0.000000e+00> : vector<16x32xf32>
    %2 = tpu.matmul %0, %1, %cst {dimension_numbers = #tpu.dot_dimension_numbers<[1], [0], [0], [1], [0, 0, 1, 1], [], []>} : vector<16x32xf32>, vector<32x32xf32>, vector<16x32xf32> -> vector<16x32xf32>
    %c0_3 = arith.constant 0 : index
    %c0_4 = arith.constant 0 : index
    %3 = vector.load %arg2[%c0_3, %c0_4] : memref<1x32xf32, #tpu.memory_space<vmem>>, vector<1x32xf32>
    %4 = vector.broadcast %3 : vector<1x32xf32> to vector<16x32xf32>
    %5 = arith.addf %2, %4 : vector<16x32xf32>
    %6 = arith.negf %5 : vector<16x32xf32>
    %7 = math.exp %6 : vector<16x32xf32>
    %cst_5 = arith.constant 1.000000e+00 : f32
    %8 = vector.broadcast %cst_5 : f32 to vector<16x32xf32>
    %9 = arith.addf %8, %7 : vector<16x32xf32>
    %10 = arith.divf %8, %9 : vector<16x32xf32>
    %11 = arith.mulf %5, %10 : vector<16x32xf32>
    %c0_6 = arith.constant 0 : index
    %c0_7 = arith.constant 0 : index
    %12 = vector.load %arg10[%c0_6, %c0_7] : memref<16x32xf32, #tpu.memory_space<vmem>>, vector<16x32xf32>
    tpu.vector_store %arg10[%c0_6, %c0_7], %11 {strides = array<i32>} : memref<16x32xf32, #tpu.memory_space<vmem>>, vector<16x32xf32>,
    %c0_8 = arith.constant 0 : index
    %c0_9 = arith.constant 0 : index
    %13 = vector.load %arg3[%c0_8, %c0_9] : memref<32x1xf32, #tpu.memory_space<vmem>>, vector<32x1xf32>
    %c0_10 = arith.constant 0 : index
    %c0_11 = arith.constant 0 : index
    %14 = vector.load %arg4[%c0_10, %c0_11] : memref<1x16xf32, #tpu.memory_space<vmem>>, vector<1x16xf32>
    %15 = vector.broadcast %13 : vector<32x1xf32> to vector<32x16xf32>
    %16 = vector.broadcast %14 : vector<1x16xf32> to vector<32x16xf32>
    %17 = arith.subf %15, %16 : vector<32x16xf32>
    %cst_12 = arith.constant 5.000000e+00 : f32
    %18 = vector.broadcast %cst_12 : f32 to vector<32x1xf32>
    %19 = arith.divf %13, %18 : vector<32x1xf32>
    %cst_13 = arith.constant 0.000000e+00 : f32
    %cst_14 = arith.constant 1.000000e+00 : f32
    %20 = vector.broadcast %cst_13 : f32 to vector<32x1xf32>
    %21 = arith.maximumf %20, %19 : vector<32x1xf32>
    %22 = vector.broadcast %cst_14 : f32 to vector<32x1xf32>
    %23 = arith.minimumf %22, %21 : vector<32x1xf32>
    %cst_15 = arith.constant 3.14159274 : f32
    %24 = vector.broadcast %cst_15 : f32 to vector<32x1xf32>
    %25 = arith.mulf %24, %23 : vector<32x1xf32>
    %26 = math.cos %25 : vector<32x1xf32>
    %cst_16 = arith.constant 1.000000e+00 : f32
    %27 = vector.broadcast %cst_16 : f32 to vector<32x1xf32>
    %28 = arith.addf %26, %27 : vector<32x1xf32>
    %cst_17 = arith.constant 5.000000e-01 : f32
    %29 = vector.broadcast %cst_17 : f32 to vector<32x1xf32>
    %30 = arith.mulf %29, %28 : vector<32x1xf32>
    %cst_18 = arith.constant -1.024000e+01 : f32
    %31 = vector.broadcast %cst_18 : f32 to vector<32x16xf32>
    %32 = arith.mulf %31, %17 : vector<32x16xf32>
    %33 = arith.mulf %32, %17 : vector<32x16xf32>
    %34 = math.exp %33 : vector<32x16xf32>
    %35 = vector.broadcast %30 : vector<32x1xf32> to vector<32x16xf32>
    %36 = arith.mulf %34, %35 : vector<32x16xf32>
    %c0_19 = arith.constant 0 : index
    %c0_20 = arith.constant 0 : index
    %37 = vector.load %arg5[%c0_19, %c0_20] : memref<16x32xf32, #tpu.memory_space<vmem>>, vector<16x32xf32>
    %cst_21 = arith.constant dense<0.000000e+00> : vector<32x32xf32>
    %38 = tpu.matmul %36, %37, %cst_21 {dimension_numbers = #tpu.dot_dimension_numbers<[1], [0], [0], [1], [0, 0, 1, 1], [], []>} : vector<32x16xf32>, vector<16x32xf32>, vector<32x32xf32> -> vector<32x32xf32>
    %c0_22 = arith.constant 0 : index
    %c0_23 = arith.constant 0 : index
    %39 = vector.load %arg6[%c0_22, %c0_23] : memref<1x32xf32, #tpu.memory_space<vmem>>, vector<1x32xf32>
    %40 = vector.broadcast %39 : vector<1x32xf32> to vector<32x32xf32>
    %41 = arith.addf %38, %40 : vector<32x32xf32>
    %c0_24 = arith.constant 0 : index
    %c0_25 = arith.constant 0 : index
    %42 = vector.load %arg11[%c0_24, %c0_25] : memref<32x32xf32, #tpu.memory_space<vmem>>, vector<32x32xf32>
    tpu.vector_store %arg11[%c0_24, %c0_25], %41 {strides = array<i32>} : memref<32x32xf32, #tpu.memory_space<vmem>>, vector<32x32xf32>,
    %c0_26 = arith.constant 0 : index
    %c0_27 = arith.constant 0 : index
    %43 = vector.load %arg7[%c0_26, %c0_27] : memref<32x3xf32, #tpu.memory_space<vmem>>, vector<32x3xf32>
    %cst_28 = arith.constant 9.99999997E-7 : f32
    %44 = vector.broadcast %cst_28 : f32 to vector<32x1xf32>
    %45 = arith.addf %13, %44 : vector<32x1xf32>
    %46 = vector.broadcast %45 : vector<32x1xf32> to vector<32x3xf32>
    %47 = arith.divf %43, %46 : vector<32x3xf32>
    %c0_29 = arith.constant 0 : index
    %c0_30 = arith.constant 0 : index
    %48 = vector.load %arg12[%c0_29, %c0_30] : memref<32x3xf32, #tpu.memory_space<vmem>>, vector<32x3xf32>
    tpu.vector_store %arg12[%c0_29, %c0_30], %47 {strides = array<i32>} : memref<32x3xf32, #tpu.memory_space<vmem>>, vector<32x3xf32>,
    %49 = tpu.iota {dimensions = array<i32: 0>} : vector<16x32xi32>
    %c0_31 = arith.constant 0 : index
    %c0_32 = arith.constant 0 : index
    %50 = vector.load %arg8[%c0_31, %c0_32] : memref<1x32xi32, #tpu.memory_space<vmem>>, vector<1x32xi32>
    %51 = vector.broadcast %50 : vector<1x32xi32> to vector<16x32xi32>
    %52 = arith.cmpi eq, %49, %51 : vector<16x32xi32>
    %53 = arith.extui %52 : vector<16x32xi1> to vector<16x32xi32>
    %54 = arith.sitofp %53 : vector<16x32xi32> to vector<16x32xf32>
    %cst_33 = arith.constant dense<0.000000e+00> : vector<16xf32>
    %55 = vector.multi_reduction <add>, %54, %cst_33 [1] : vector<16x32xf32> to vector<16xf32>
    %56 = vector.shape_cast %55 : vector<16xf32> to vector<16x1xf32>
    %cst_34 = arith.constant 1.000000e+00 : f32
    %57 = vector.broadcast %cst_34 : f32 to vector<16x1xf32>
    %58 = arith.maximumf %56, %57 : vector<16x1xf32>
    %59 = tpu.reciprocal %58 {approx = true} : vector<16x1xf32> -> vector<16x1xf32>
    %c0_35 = arith.constant 0 : index
    %c0_36 = arith.constant 0 : index
    %60 = vector.load %arg14[%c0_35, %c0_36] : memref<16x1xf32, #tpu.memory_space<vmem>>, vector<16x1xf32>
    tpu.vector_store %arg14[%c0_35, %c0_36], %59 {strides = array<i32>} : memref<16x1xf32, #tpu.memory_space<vmem>>, vector<16x1xf32>,
    %cst_37 = arith.constant dense<0.000000e+00> : vector<16x3xf32>
    %61 = tpu.matmul %54, %47, %cst_37 {dimension_numbers = #tpu.dot_dimension_numbers<[1], [0], [0], [1], [0, 0, 1, 1], [], []>} : vector<16x32xf32>, vector<32x3xf32>, vector<16x3xf32> -> vector<16x3xf32>
    %62 = vector.broadcast %59 : vector<16x1xf32> to vector<16x3xf32>
    %63 = arith.mulf %61, %62 : vector<16x3xf32>
    %64 = arith.mulf %63, %63 : vector<16x3xf32>
    %cst_38 = arith.constant dense<0.000000e+00> : vector<16xf32>
    %65 = vector.multi_reduction <add>, %64, %cst_38 [1] : vector<16x3xf32> to vector<16xf32>
    %66 = vector.shape_cast %65 : vector<16xf32> to vector<16x1xf32>
    %67 = math.sqrt %66 : vector<16x1xf32>
    %c0_39 = arith.constant 0 : index
    %c0_40 = arith.constant 0 : index
    %68 = vector.load %arg9[%c0_39, %c0_40] : memref<16x3xf32, #tpu.memory_space<vmem>>, vector<16x3xf32>
    %69 = arith.mulf %68, %68 : vector<16x3xf32>
    %cst_41 = arith.constant dense<0.000000e+00> : vector<16xf32>
    %70 = vector.multi_reduction <add>, %69, %cst_41 [1] : vector<16x3xf32> to vector<16xf32>
    %71 = vector.shape_cast %70 : vector<16xf32> to vector<16x1xf32>
    %72 = math.sqrt %71 : vector<16x1xf32>
    %cst_42 = arith.constant 9.99999997E-7 : f32
    %73 = vector.broadcast %cst_42 : f32 to vector<16x1xf32>
    %74 = arith.maximumf %72, %73 : vector<16x1xf32>
    %75 = vector.broadcast %74 : vector<16x1xf32> to vector<16x3xf32>
    %76 = arith.divf %68, %75 : vector<16x3xf32>
    %cst_43 = arith.constant 0.000000e+00 : f32
    %77 = vector.broadcast %cst_43 : f32 to vector<16x1xf32>
    %78 = arith.cmpf oeq, %67, %77 : vector<16x1xf32>
    %79 = vector.shape_cast %78 : vector<16x1xi1> to vector<16x1xi1>
    %80 = vector.broadcast %79 : vector<16x1xi1> to vector<16x3xi1>
    %81 = arith.select %80, %76, %63 : vector<16x3xi1>, vector<16x3xf32>
    %c0_44 = arith.constant 0 : index
    %c0_45 = arith.constant 0 : index
    %82 = vector.load %arg13[%c0_44, %c0_45] : memref<16x3xf32, #tpu.memory_space<vmem>>, vector<16x3xf32>
    tpu.vector_store %arg13[%c0_44, %c0_45], %81 {strides = array<i32>} : memref<16x3xf32, #tpu.memory_space<vmem>>, vector<16x3xf32>,
    return
  }
}

module attributes {stable_mosaic.version = 11 : i64} {
  func.func @_layer_stack_kernel(%arg0: i32, %arg1: memref<16x32xf32, #tpu.memory_space<vmem>>, %arg2: memref<16x3xf32, #tpu.memory_space<vmem>>, %arg3: memref<32x32xf32, #tpu.memory_space<vmem>>, %arg4: memref<32x3xf32, #tpu.memory_space<vmem>>, %arg5: memref<32x1xi32, #tpu.memory_space<vmem>>, %arg6: memref<1x32xi32, #tpu.memory_space<vmem>>, %arg7: memref<16x1xf32, #tpu.memory_space<vmem>>, %arg8: memref<1x32x32xf32, #tpu.memory_space<vmem>>, %arg9: memref<1x1x32xf32, #tpu.memory_space<vmem>>, %arg10: memref<1x32x32xf32, #tpu.memory_space<vmem>>, %arg11: memref<1x1x32xf32, #tpu.memory_space<vmem>>, %arg12: memref<1x32x1xf32, #tpu.memory_space<vmem>>, %arg13: memref<1x1x1xf32, #tpu.memory_space<vmem>>, %arg14: memref<1x32x96xf32, #tpu.memory_space<vmem>>, %arg15: memref<1x1x96xf32, #tpu.memory_space<vmem>>, %arg16: memref<1x32x32xf32, #tpu.memory_space<vmem>>, %arg17: memref<1x1x32xf32, #tpu.memory_space<vmem>>, %arg18: memref<16x32xf32, #tpu.memory_space<vmem>>, %arg19: memref<16x3xf32, #tpu.memory_space<vmem>>, %arg20: memref<16x32xf32, #tpu.memory_space<vmem>>, %arg21: memref<16x3xf32, #tpu.memory_space<vmem>>, %arg22: memref<32x16xf32, #tpu.memory_space<vmem>>, %arg23: memref<16x32xf32, #tpu.memory_space<vmem>>) attributes {dimension_semantics = [#tpu.dimension_semantics<arbitrary>], iteration_bounds = array<i64: 2>, scalar_prefetch = 0 : i64, scratch_operands = 4 : i64, tpu.core_type = #tpu.core_type<tc>, window_params = [{pipeline_mode = #tpu.pipeline_mode<synchronous>, transform_indices = @transform_0, window_bounds = array<i64: 16, 32>}, {pipeline_mode = #tpu.pipeline_mode<synchronous>, transform_indices = @transform_1, window_bounds = array<i64: 16, 3>}, {pipeline_mode = #tpu.pipeline_mode<synchronous>, transform_indices = @transform_2, window_bounds = array<i64: 32, 32>}, {pipeline_mode = #tpu.pipeline_mode<synchronous>, transform_indices = @transform_3, window_bounds = array<i64: 32, 3>}, {pipeline_mode = #tpu.pipeline_mode<synchronous>, transform_indices = @transform_4, window_bounds = array<i64: 32, 1>}, {pipeline_mode = #tpu.pipeline_mode<synchronous>, transform_indices = @transform_5, window_bounds = array<i64: 1, 32>}, {pipeline_mode = #tpu.pipeline_mode<synchronous>, transform_indices = @transform_6, window_bounds = array<i64: 16, 1>}, {transform_indices = @transform_7, window_bounds = array<i64: 1, 32, 32>}, {transform_indices = @transform_8, window_bounds = array<i64: 1, 1, 32>}, {transform_indices = @transform_9, window_bounds = array<i64: 1, 32, 32>}, {transform_indices = @transform_10, window_bounds = array<i64: 1, 1, 32>}, {transform_indices = @transform_11, window_bounds = array<i64: 1, 32, 1>}, {transform_indices = @transform_12, window_bounds = array<i64: 1, 1, 1>}, {transform_indices = @transform_13, window_bounds = array<i64: 1, 32, 96>}, {transform_indices = @transform_14, window_bounds = array<i64: 1, 1, 96>}, {transform_indices = @transform_15, window_bounds = array<i64: 1, 32, 32>}, {transform_indices = @transform_16, window_bounds = array<i64: 1, 1, 32>}, {pipeline_mode = #tpu.pipeline_mode<synchronous>, transform_indices = @transform_17, window_bounds = array<i64: 16, 32>}, {pipeline_mode = #tpu.pipeline_mode<synchronous>, transform_indices = @transform_18, window_bounds = array<i64: 16, 3>}]} {
    %c0_i32 = arith.constant 0 : i32
    %0 = arith.cmpi eq, %arg0, %c0_i32 : i32
    %1 = arith.extui %0 : i1 to i32
    %c0_i32_0 = arith.constant 0 : i32
    %2 = arith.cmpi ne, %1, %c0_i32_0 : i32
    scf.if %2 {
      %c0_84 = arith.constant 0 : index
      %c0_85 = arith.constant 0 : index
      %148 = vector.load %arg1[%c0_84, %c0_85] : memref<16x32xf32, #tpu.memory_space<vmem>>, vector<16x32xf32>
      %c0_86 = arith.constant 0 : index
      %c0_87 = arith.constant 0 : index
      %149 = vector.load %arg20[%c0_86, %c0_87] : memref<16x32xf32, #tpu.memory_space<vmem>>, vector<16x32xf32>
      tpu.vector_store %arg20[%c0_86, %c0_87], %148 {strides = array<i32>} : memref<16x32xf32, #tpu.memory_space<vmem>>, vector<16x32xf32>,
      %c0_88 = arith.constant 0 : index
      %c0_89 = arith.constant 0 : index
      %150 = vector.load %arg2[%c0_88, %c0_89] : memref<16x3xf32, #tpu.memory_space<vmem>>, vector<16x3xf32>
      %c0_90 = arith.constant 0 : index
      %c0_91 = arith.constant 0 : index
      %151 = vector.load %arg21[%c0_90, %c0_91] : memref<16x3xf32, #tpu.memory_space<vmem>>, vector<16x3xf32>
      tpu.vector_store %arg21[%c0_90, %c0_91], %150 {strides = array<i32>} : memref<16x3xf32, #tpu.memory_space<vmem>>, vector<16x3xf32>,
      %152 = tpu.iota {dimensions = array<i32: 1>} : vector<32x16xi32>
      %c0_92 = arith.constant 0 : index
      %c0_93 = arith.constant 0 : index
      %153 = vector.load %arg5[%c0_92, %c0_93] : memref<32x1xi32, #tpu.memory_space<vmem>>, vector<32x1xi32>
      %154 = vector.broadcast %153 : vector<32x1xi32> to vector<32x16xi32>
      %155 = arith.cmpi eq, %152, %154 : vector<32x16xi32>
      %156 = arith.extui %155 : vector<32x16xi1> to vector<32x16xi32>
      %157 = arith.sitofp %156 : vector<32x16xi32> to vector<32x16xf32>
      %c0_94 = arith.constant 0 : index
      %c0_95 = arith.constant 0 : index
      %158 = vector.load %arg22[%c0_94, %c0_95] : memref<32x16xf32, #tpu.memory_space<vmem>>, vector<32x16xf32>
      tpu.vector_store %arg22[%c0_94, %c0_95], %157 {strides = array<i32>} : memref<32x16xf32, #tpu.memory_space<vmem>>, vector<32x16xf32>,
      %159 = tpu.iota {dimensions = array<i32: 0>} : vector<16x32xi32>
      %c0_96 = arith.constant 0 : index
      %c0_97 = arith.constant 0 : index
      %160 = vector.load %arg6[%c0_96, %c0_97] : memref<1x32xi32, #tpu.memory_space<vmem>>, vector<1x32xi32>
      %161 = vector.broadcast %160 : vector<1x32xi32> to vector<16x32xi32>
      %162 = arith.cmpi eq, %159, %161 : vector<16x32xi32>
      %163 = arith.extui %162 : vector<16x32xi1> to vector<16x32xi32>
      %164 = arith.sitofp %163 : vector<16x32xi32> to vector<16x32xf32>
      %c0_98 = arith.constant 0 : index
      %c0_99 = arith.constant 0 : index
      %165 = vector.load %arg23[%c0_98, %c0_99] : memref<16x32xf32, #tpu.memory_space<vmem>>, vector<16x32xf32>
      tpu.vector_store %arg23[%c0_98, %c0_99], %164 {strides = array<i32>} : memref<16x32xf32, #tpu.memory_space<vmem>>, vector<16x32xf32>,
    } else {
    }
    %c0 = arith.constant 0 : index
    %c0_1 = arith.constant 0 : index
    %3 = vector.load %arg20[%c0, %c0_1] : memref<16x32xf32, #tpu.memory_space<vmem>>, vector<16x32xf32>
    %c0_2 = arith.constant 0 : index
    %c0_3 = arith.constant 0 : index
    %4 = vector.load %arg3[%c0_2, %c0_3] : memref<32x32xf32, #tpu.memory_space<vmem>>, vector<32x32xf32>
    %c0_4 = arith.constant 0 : index
    %c0_5 = arith.constant 0 : index
    %5 = vector.load %arg4[%c0_4, %c0_5] : memref<32x3xf32, #tpu.memory_space<vmem>>, vector<32x3xf32>
    %c0_6 = arith.constant 0 : index
    %c0_7 = arith.constant 0 : index
    %6 = vector.load %arg22[%c0_6, %c0_7] : memref<32x16xf32, #tpu.memory_space<vmem>>, vector<32x16xf32>
    %cst = arith.constant dense<0.000000e+00> : vector<32x32xf32>
    %7 = tpu.matmul %6, %3, %cst {dimension_numbers = #tpu.dot_dimension_numbers<[1], [0], [0], [1], [0, 0, 1, 1], [], []>} : vector<32x16xf32>, vector<16x32xf32>, vector<32x32xf32> -> vector<32x32xf32>
    %8 = arith.mulf %7, %4 : vector<32x32xf32>
    %c0_8 = arith.constant 0 : index
    %c0_9 = arith.constant 0 : index
    %c0_10 = arith.constant 0 : index
    %9 = vector.load %arg8[%c0_8, %c0_9, %c0_10] : memref<1x32x32xf32, #tpu.memory_space<vmem>>, vector<1x32x32xf32>
    %10 = vector.shape_cast %9 : vector<1x32x32xf32> to vector<32x32xf32>
    %cst_11 = arith.constant dense<0.000000e+00> : vector<32x32xf32>
    %11 = tpu.matmul %8, %10, %cst_11 {dimension_numbers = #tpu.dot_dimension_numbers<[1], [0], [0], [1], [0, 0, 1, 1], [], []>} : vector<32x32xf32>, vector<32x32xf32>, vector<32x32xf32> -> vector<32x32xf32>
    %c0_12 = arith.constant 0 : index
    %c0_13 = arith.constant 0 : index
    %c0_14 = arith.constant 0 : index
    %12 = vector.load %arg9[%c0_12, %c0_13, %c0_14] : memref<1x1x32xf32, #tpu.memory_space<vmem>>, vector<1x1x32xf32>
    %13 = vector.shape_cast %12 : vector<1x1x32xf32> to vector<1x32xf32>
    %14 = vector.broadcast %13 : vector<1x32xf32> to vector<32x32xf32>
    %15 = arith.addf %11, %14 : vector<32x32xf32>
    %16 = arith.negf %15 : vector<32x32xf32>
    %17 = math.exp %16 : vector<32x32xf32>
    %cst_15 = arith.constant 1.000000e+00 : f32
    %18 = vector.broadcast %cst_15 : f32 to vector<32x32xf32>
    %19 = arith.addf %18, %17 : vector<32x32xf32>
    %20 = arith.divf %18, %19 : vector<32x32xf32>
    %21 = arith.mulf %15, %20 : vector<32x32xf32>
    %c0_16 = arith.constant 0 : index
    %c0_17 = arith.constant 0 : index
    %c0_18 = arith.constant 0 : index
    %22 = vector.load %arg12[%c0_16, %c0_17, %c0_18] : memref<1x32x1xf32, #tpu.memory_space<vmem>>, vector<1x32x1xf32>
    %23 = vector.shape_cast %22 : vector<1x32x1xf32> to vector<32x1xf32>
    %cst_19 = arith.constant dense<0.000000e+00> : vector<32x1xf32>
    %24 = tpu.matmul %21, %23, %cst_19 {dimension_numbers = #tpu.dot_dimension_numbers<[1], [0], [0], [1], [0, 0, 1, 1], [], []>} : vector<32x32xf32>, vector<32x1xf32>, vector<32x1xf32> -> vector<32x1xf32>
    %c0_20 = arith.constant 0 : index
    %c0_21 = arith.constant 0 : index
    %c0_22 = arith.constant 0 : index
    %25 = vector.load %arg13[%c0_20, %c0_21, %c0_22] : memref<1x1x1xf32, #tpu.memory_space<vmem>>, vector<1x1x1xf32>
    %26 = vector.shape_cast %25 : vector<1x1x1xf32> to vector<1x1xf32>
    %27 = vector.broadcast %26 : vector<1x1xf32> to vector<32x1xf32>
    %28 = arith.addf %24, %27 : vector<32x1xf32>
    %29 = vector.broadcast %28 : vector<32x1xf32> to vector<32x3xf32>
    %30 = arith.mulf %29, %5 : vector<32x3xf32>
    %c0_23 = arith.constant 0 : index
    %c0_24 = arith.constant 0 : index
    %31 = vector.load %arg23[%c0_23, %c0_24] : memref<16x32xf32, #tpu.memory_space<vmem>>, vector<16x32xf32>
    %cst_25 = arith.constant dense<0.000000e+00> : vector<16x32xf32>
    %32 = tpu.matmul %31, %21, %cst_25 {dimension_numbers = #tpu.dot_dimension_numbers<[1], [0], [0], [1], [0, 0, 1, 1], [], []>} : vector<16x32xf32>, vector<32x32xf32>, vector<16x32xf32> -> vector<16x32xf32>
    %cst_26 = arith.constant dense<0.000000e+00> : vector<16x3xf32>
    %33 = tpu.matmul %31, %30, %cst_26 {dimension_numbers = #tpu.dot_dimension_numbers<[1], [0], [0], [1], [0, 0, 1, 1], [], []>} : vector<16x32xf32>, vector<32x3xf32>, vector<16x3xf32> -> vector<16x3xf32>
    %c0_27 = arith.constant 0 : index
    %c0_28 = arith.constant 0 : index
    %34 = vector.load %arg7[%c0_27, %c0_28] : memref<16x1xf32, #tpu.memory_space<vmem>>, vector<16x1xf32>
    %35 = vector.broadcast %34 : vector<16x1xf32> to vector<16x32xf32>
    %36 = arith.mulf %32, %35 : vector<16x32xf32>
    %37 = vector.broadcast %34 : vector<16x1xf32> to vector<16x3xf32>
    %38 = arith.mulf %33, %37 : vector<16x3xf32>
    %c0_29 = arith.constant 0 : index
    %c0_30 = arith.constant 0 : index
    %c0_31 = arith.constant 0 : index
    %39 = vector.load %arg10[%c0_29, %c0_30, %c0_31] : memref<1x32x32xf32, #tpu.memory_space<vmem>>, vector<1x32x32xf32>
    %40 = vector.shape_cast %39 : vector<1x32x32xf32> to vector<32x32xf32>
    %cst_32 = arith.constant dense<0.000000e+00> : vector<16x32xf32>
    %41 = tpu.matmul %36, %40, %cst_32 {dimension_numbers = #tpu.dot_dimension_numbers<[1], [0], [0], [1], [0, 0, 1, 1], [], []>} : vector<16x32xf32>, vector<32x32xf32>, vector<16x32xf32> -> vector<16x32xf32>
    %c0_33 = arith.constant 0 : index
    %c0_34 = arith.constant 0 : index
    %c0_35 = arith.constant 0 : index
    %42 = vector.load %arg11[%c0_33, %c0_34, %c0_35] : memref<1x1x32xf32, #tpu.memory_space<vmem>>, vector<1x1x32xf32>
    %43 = vector.shape_cast %42 : vector<1x1x32xf32> to vector<1x32xf32>
    %44 = vector.broadcast %43 : vector<1x32xf32> to vector<16x32xf32>
    %45 = arith.addf %41, %44 : vector<16x32xf32>
    %46 = arith.addf %3, %45 : vector<16x32xf32>
    %c0_36 = arith.constant 0 : index
    %c0_37 = arith.constant 0 : index
    %47 = vector.load %arg21[%c0_36, %c0_37] : memref<16x3xf32, #tpu.memory_space<vmem>>, vector<16x3xf32>
    %48 = arith.addf %47, %38 : vector<16x3xf32>
    %c0_38 = arith.constant 0 : index
    %c0_39 = arith.constant 0 : index
    %49 = vector.load %arg21[%c0_38, %c0_39] : memref<16x3xf32, #tpu.memory_space<vmem>>, vector<16x3xf32>
    tpu.vector_store %arg21[%c0_38, %c0_39], %48 {strides = array<i32>} : memref<16x3xf32, #tpu.memory_space<vmem>>, vector<16x3xf32>,
    %c0_40 = arith.constant 0 : index
    %c0_41 = arith.constant 0 : index
    %c0_42 = arith.constant 0 : index
    %50 = vector.load %arg14[%c0_40, %c0_41, %c0_42] : memref<1x32x96xf32, #tpu.memory_space<vmem>>, vector<1x32x96xf32>
    %51 = vector.shape_cast %50 : vector<1x32x96xf32> to vector<32x96xf32>
    %cst_43 = arith.constant dense<0.000000e+00> : vector<16x96xf32>
    %52 = tpu.matmul %46, %51, %cst_43 {dimension_numbers = #tpu.dot_dimension_numbers<[1], [0], [0], [1], [0, 0, 1, 1], [], []>} : vector<16x32xf32>, vector<32x96xf32>, vector<16x96xf32> -> vector<16x96xf32>
    %c0_44 = arith.constant 0 : index
    %c0_45 = arith.constant 0 : index
    %c0_46 = arith.constant 0 : index
    %53 = vector.load %arg15[%c0_44, %c0_45, %c0_46] : memref<1x1x96xf32, #tpu.memory_space<vmem>>, vector<1x1x96xf32>
    %54 = vector.shape_cast %53 : vector<1x1x96xf32> to vector<1x96xf32>
    %55 = vector.broadcast %54 : vector<1x96xf32> to vector<16x96xf32>
    %56 = arith.addf %52, %55 : vector<16x96xf32>
    %c0_47 = arith.constant 0 : index
    %c0_48 = arith.constant 0 : index
    %c0_49 = arith.constant 0 : index
    %57 = vector.load %arg16[%c0_47, %c0_48, %c0_49] : memref<1x32x32xf32, #tpu.memory_space<vmem>>, vector<1x32x32xf32>
    %58 = vector.shape_cast %57 : vector<1x32x32xf32> to vector<32x32xf32>
    %cst_50 = arith.constant 0.000000e+00 : f32
    %59 = vector.broadcast %cst_50 : f32 to vector<16x32xf32>
    %60 = vector.extract_strided_slice %56 {offsets = [0, 0], sizes = [16, 8], strides = [1, 1]} : vector<16x96xf32> to vector<16x8xf32>
    %61 = vector.extract_strided_slice %56 {offsets = [0, 32], sizes = [16, 8], strides = [1, 1]} : vector<16x96xf32> to vector<16x8xf32>
    %62 = vector.extract_strided_slice %56 {offsets = [0, 64], sizes = [16, 8], strides = [1, 1]} : vector<16x96xf32> to vector<16x8xf32>
    %cst_51 = arith.constant dense<0.000000e+00> : vector<16x16xf32>
    %63 = tpu.matmul %60, %61, %cst_51 {dimension_numbers = #tpu.dot_dimension_numbers<[1], [1], [0], [0], [0, 0, 1, 0], [], []>} : vector<16x8xf32>, vector<16x8xf32>, vector<16x16xf32> -> vector<16x16xf32>
    %cst_52 = arith.constant 0.353553385 : f32
    %64 = vector.broadcast %cst_52 : f32 to vector<16x16xf32>
    %65 = arith.mulf %63, %64 : vector<16x16xf32>
    %cst_53 = arith.constant dense<0xFF800000> : vector<16xf32>
    %66 = vector.multi_reduction <maximumf>, %65, %cst_53 [1] : vector<16x16xf32> to vector<16xf32>
    %67 = vector.shape_cast %66 : vector<16xf32> to vector<16x1xf32>
    %68 = vector.broadcast %67 : vector<16x1xf32> to vector<16x16xf32>
    %69 = arith.subf %65, %68 : vector<16x16xf32>
    %70 = math.exp %69 : vector<16x16xf32>
    %cst_54 = arith.constant dense<0.000000e+00> : vector<16xf32>
    %71 = vector.multi_reduction <add>, %70, %cst_54 [1] : vector<16x16xf32> to vector<16xf32>
    %72 = vector.shape_cast %71 : vector<16xf32> to vector<16x1xf32>
    %73 = tpu.reciprocal %72 {approx = true} : vector<16x1xf32> -> vector<16x1xf32>
    %74 = vector.broadcast %73 : vector<16x1xf32> to vector<16x16xf32>
    %75 = arith.mulf %70, %74 : vector<16x16xf32>
    %cst_55 = arith.constant dense<0.000000e+00> : vector<16x8xf32>
    %76 = tpu.matmul %75, %62, %cst_55 {dimension_numbers = #tpu.dot_dimension_numbers<[1], [0], [0], [1], [0, 0, 1, 1], [], []>} : vector<16x16xf32>, vector<16x8xf32>, vector<16x8xf32> -> vector<16x8xf32>
    %77 = vector.extract_strided_slice %58 {offsets = [0, 0], sizes = [8, 32], strides = [1, 1]} : vector<32x32xf32> to vector<8x32xf32>
    %cst_56 = arith.constant dense<0.000000e+00> : vector<16x32xf32>
    %78 = tpu.matmul %76, %77, %cst_56 {dimension_numbers = #tpu.dot_dimension_numbers<[1], [0], [0], [1], [0, 0, 1, 1], [], []>} : vector<16x8xf32>, vector<8x32xf32>, vector<16x32xf32> -> vector<16x32xf32>
    %79 = arith.addf %59, %78 : vector<16x32xf32>
    %80 = vector.extract_strided_slice %56 {offsets = [0, 8], sizes = [16, 8], strides = [1, 1]} : vector<16x96xf32> to vector<16x8xf32>
    %81 = vector.extract_strided_slice %56 {offsets = [0, 40], sizes = [16, 8], strides = [1, 1]} : vector<16x96xf32> to vector<16x8xf32>
    %82 = vector.extract_strided_slice %56 {offsets = [0, 72], sizes = [16, 8], strides = [1, 1]} : vector<16x96xf32> to vector<16x8xf32>
    %cst_57 = arith.constant dense<0.000000e+00> : vector<16x16xf32>
    %83 = tpu.matmul %80, %81, %cst_57 {dimension_numbers = #tpu.dot_dimension_numbers<[1], [1], [0], [0], [0, 0, 1, 0], [], []>} : vector<16x8xf32>, vector<16x8xf32>, vector<16x16xf32> -> vector<16x16xf32>
    %cst_58 = arith.constant 0.353553385 : f32
    %84 = vector.broadcast %cst_58 : f32 to vector<16x16xf32>
    %85 = arith.mulf %83, %84 : vector<16x16xf32>
    %cst_59 = arith.constant dense<0xFF800000> : vector<16xf32>
    %86 = vector.multi_reduction <maximumf>, %85, %cst_59 [1] : vector<16x16xf32> to vector<16xf32>
    %87 = vector.shape_cast %86 : vector<16xf32> to vector<16x1xf32>
    %88 = vector.broadcast %87 : vector<16x1xf32> to vector<16x16xf32>
    %89 = arith.subf %85, %88 : vector<16x16xf32>
    %90 = math.exp %89 : vector<16x16xf32>
    %cst_60 = arith.constant dense<0.000000e+00> : vector<16xf32>
    %91 = vector.multi_reduction <add>, %90, %cst_60 [1] : vector<16x16xf32> to vector<16xf32>
    %92 = vector.shape_cast %91 : vector<16xf32> to vector<16x1xf32>
    %93 = tpu.reciprocal %92 {approx = true} : vector<16x1xf32> -> vector<16x1xf32>
    %94 = vector.broadcast %93 : vector<16x1xf32> to vector<16x16xf32>
    %95 = arith.mulf %90, %94 : vector<16x16xf32>
    %cst_61 = arith.constant dense<0.000000e+00> : vector<16x8xf32>
    %96 = tpu.matmul %95, %82, %cst_61 {dimension_numbers = #tpu.dot_dimension_numbers<[1], [0], [0], [1], [0, 0, 1, 1], [], []>} : vector<16x16xf32>, vector<16x8xf32>, vector<16x8xf32> -> vector<16x8xf32>
    %97 = vector.extract_strided_slice %58 {offsets = [8, 0], sizes = [8, 32], strides = [1, 1]} : vector<32x32xf32> to vector<8x32xf32>
    %cst_62 = arith.constant dense<0.000000e+00> : vector<16x32xf32>
    %98 = tpu.matmul %96, %97, %cst_62 {dimension_numbers = #tpu.dot_dimension_numbers<[1], [0], [0], [1], [0, 0, 1, 1], [], []>} : vector<16x8xf32>, vector<8x32xf32>, vector<16x32xf32> -> vector<16x32xf32>
    %99 = arith.addf %79, %98 : vector<16x32xf32>
    %100 = vector.extract_strided_slice %56 {offsets = [0, 16], sizes = [16, 8], strides = [1, 1]} : vector<16x96xf32> to vector<16x8xf32>
    %101 = vector.extract_strided_slice %56 {offsets = [0, 48], sizes = [16, 8], strides = [1, 1]} : vector<16x96xf32> to vector<16x8xf32>
    %102 = vector.extract_strided_slice %56 {offsets = [0, 80], sizes = [16, 8], strides = [1, 1]} : vector<16x96xf32> to vector<16x8xf32>
    %cst_63 = arith.constant dense<0.000000e+00> : vector<16x16xf32>
    %103 = tpu.matmul %100, %101, %cst_63 {dimension_numbers = #tpu.dot_dimension_numbers<[1], [1], [0], [0], [0, 0, 1, 0], [], []>} : vector<16x8xf32>, vector<16x8xf32>, vector<16x16xf32> -> vector<16x16xf32>
    %cst_64 = arith.constant 0.353553385 : f32
    %104 = vector.broadcast %cst_64 : f32 to vector<16x16xf32>
    %105 = arith.mulf %103, %104 : vector<16x16xf32>
    %cst_65 = arith.constant dense<0xFF800000> : vector<16xf32>
    %106 = vector.multi_reduction <maximumf>, %105, %cst_65 [1] : vector<16x16xf32> to vector<16xf32>
    %107 = vector.shape_cast %106 : vector<16xf32> to vector<16x1xf32>
    %108 = vector.broadcast %107 : vector<16x1xf32> to vector<16x16xf32>
    %109 = arith.subf %105, %108 : vector<16x16xf32>
    %110 = math.exp %109 : vector<16x16xf32>
    %cst_66 = arith.constant dense<0.000000e+00> : vector<16xf32>
    %111 = vector.multi_reduction <add>, %110, %cst_66 [1] : vector<16x16xf32> to vector<16xf32>
    %112 = vector.shape_cast %111 : vector<16xf32> to vector<16x1xf32>
    %113 = tpu.reciprocal %112 {approx = true} : vector<16x1xf32> -> vector<16x1xf32>
    %114 = vector.broadcast %113 : vector<16x1xf32> to vector<16x16xf32>
    %115 = arith.mulf %110, %114 : vector<16x16xf32>
    %cst_67 = arith.constant dense<0.000000e+00> : vector<16x8xf32>
    %116 = tpu.matmul %115, %102, %cst_67 {dimension_numbers = #tpu.dot_dimension_numbers<[1], [0], [0], [1], [0, 0, 1, 1], [], []>} : vector<16x16xf32>, vector<16x8xf32>, vector<16x8xf32> -> vector<16x8xf32>
    %117 = vector.extract_strided_slice %58 {offsets = [16, 0], sizes = [8, 32], strides = [1, 1]} : vector<32x32xf32> to vector<8x32xf32>
    %cst_68 = arith.constant dense<0.000000e+00> : vector<16x32xf32>
    %118 = tpu.matmul %116, %117, %cst_68 {dimension_numbers = #tpu.dot_dimension_numbers<[1], [0], [0], [1], [0, 0, 1, 1], [], []>} : vector<16x8xf32>, vector<8x32xf32>, vector<16x32xf32> -> vector<16x32xf32>
    %119 = arith.addf %99, %118 : vector<16x32xf32>
    %120 = vector.extract_strided_slice %56 {offsets = [0, 24], sizes = [16, 8], strides = [1, 1]} : vector<16x96xf32> to vector<16x8xf32>
    %121 = vector.extract_strided_slice %56 {offsets = [0, 56], sizes = [16, 8], strides = [1, 1]} : vector<16x96xf32> to vector<16x8xf32>
    %122 = vector.extract_strided_slice %56 {offsets = [0, 88], sizes = [16, 8], strides = [1, 1]} : vector<16x96xf32> to vector<16x8xf32>
    %cst_69 = arith.constant dense<0.000000e+00> : vector<16x16xf32>
    %123 = tpu.matmul %120, %121, %cst_69 {dimension_numbers = #tpu.dot_dimension_numbers<[1], [1], [0], [0], [0, 0, 1, 0], [], []>} : vector<16x8xf32>, vector<16x8xf32>, vector<16x16xf32> -> vector<16x16xf32>
    %cst_70 = arith.constant 0.353553385 : f32
    %124 = vector.broadcast %cst_70 : f32 to vector<16x16xf32>
    %125 = arith.mulf %123, %124 : vector<16x16xf32>
    %cst_71 = arith.constant dense<0xFF800000> : vector<16xf32>
    %126 = vector.multi_reduction <maximumf>, %125, %cst_71 [1] : vector<16x16xf32> to vector<16xf32>
    %127 = vector.shape_cast %126 : vector<16xf32> to vector<16x1xf32>
    %128 = vector.broadcast %127 : vector<16x1xf32> to vector<16x16xf32>
    %129 = arith.subf %125, %128 : vector<16x16xf32>
    %130 = math.exp %129 : vector<16x16xf32>
    %cst_72 = arith.constant dense<0.000000e+00> : vector<16xf32>
    %131 = vector.multi_reduction <add>, %130, %cst_72 [1] : vector<16x16xf32> to vector<16xf32>
    %132 = vector.shape_cast %131 : vector<16xf32> to vector<16x1xf32>
    %133 = tpu.reciprocal %132 {approx = true} : vector<16x1xf32> -> vector<16x1xf32>
    %134 = vector.broadcast %133 : vector<16x1xf32> to vector<16x16xf32>
    %135 = arith.mulf %130, %134 : vector<16x16xf32>
    %cst_73 = arith.constant dense<0.000000e+00> : vector<16x8xf32>
    %136 = tpu.matmul %135, %122, %cst_73 {dimension_numbers = #tpu.dot_dimension_numbers<[1], [0], [0], [1], [0, 0, 1, 1], [], []>} : vector<16x16xf32>, vector<16x8xf32>, vector<16x8xf32> -> vector<16x8xf32>
    %137 = vector.extract_strided_slice %58 {offsets = [24, 0], sizes = [8, 32], strides = [1, 1]} : vector<32x32xf32> to vector<8x32xf32>
    %cst_74 = arith.constant dense<0.000000e+00> : vector<16x32xf32>
    %138 = tpu.matmul %136, %137, %cst_74 {dimension_numbers = #tpu.dot_dimension_numbers<[1], [0], [0], [1], [0, 0, 1, 1], [], []>} : vector<16x8xf32>, vector<8x32xf32>, vector<16x32xf32> -> vector<16x32xf32>
    %139 = arith.addf %119, %138 : vector<16x32xf32>
    %140 = arith.addf %46, %139 : vector<16x32xf32>
    %c0_75 = arith.constant 0 : index
    %c0_76 = arith.constant 0 : index
    %c0_77 = arith.constant 0 : index
    %141 = vector.load %arg17[%c0_75, %c0_76, %c0_77] : memref<1x1x32xf32, #tpu.memory_space<vmem>>, vector<1x1x32xf32>
    %142 = vector.shape_cast %141 : vector<1x1x32xf32> to vector<1x32xf32>
    %143 = vector.broadcast %142 : vector<1x32xf32> to vector<16x32xf32>
    %144 = arith.addf %140, %143 : vector<16x32xf32>
    %c0_78 = arith.constant 0 : index
    %c0_79 = arith.constant 0 : index
    %145 = vector.load %arg20[%c0_78, %c0_79] : memref<16x32xf32, #tpu.memory_space<vmem>>, vector<16x32xf32>
    tpu.vector_store %arg20[%c0_78, %c0_79], %144 {strides = array<i32>} : memref<16x32xf32, #tpu.memory_space<vmem>>, vector<16x32xf32>,
    %c0_80 = arith.constant 0 : index
    %c0_81 = arith.constant 0 : index
    %146 = vector.load %arg18[%c0_80, %c0_81] : memref<16x32xf32, #tpu.memory_space<vmem>>, vector<16x32xf32>
    tpu.vector_store %arg18[%c0_80, %c0_81], %144 {strides = array<i32>} : memref<16x32xf32, #tpu.memory_space<vmem>>, vector<16x32xf32>,
    %c0_82 = arith.constant 0 : index
    %c0_83 = arith.constant 0 : index
    %147 = vector.load %arg19[%c0_82, %c0_83] : memref<16x3xf32, #tpu.memory_space<vmem>>, vector<16x3xf32>
    tpu.vector_store %arg19[%c0_82, %c0_83], %48 {strides = array<i32>} : memref<16x3xf32, #tpu.memory_space<vmem>>, vector<16x3xf32>,
    return
  }
  func.func @transform_0(%arg0: i32) -> (i32, i32) {
    %c0_i32 = arith.constant 0 : i32
    %c0_i32_0 = arith.constant 0 : i32
    %c0_i32_1 = arith.constant 0 : i32
    return %c0_i32, %c0_i32_0 : i32, i32
  }
  func.func @transform_1(%arg0: i32) -> (i32, i32) {
    %c0_i32 = arith.constant 0 : i32
    %c0_i32_0 = arith.constant 0 : i32
    %c0_i32_1 = arith.constant 0 : i32
    return %c0_i32, %c0_i32_0 : i32, i32
  }
  func.func @transform_2(%arg0: i32) -> (i32, i32) {
    %c0_i32 = arith.constant 0 : i32
    %c0_i32_0 = arith.constant 0 : i32
    %c0_i32_1 = arith.constant 0 : i32
    return %c0_i32, %c0_i32_0 : i32, i32
  }
  func.func @transform_3(%arg0: i32) -> (i32, i32) {
    %c0_i32 = arith.constant 0 : i32
    %c0_i32_0 = arith.constant 0 : i32
    %c0_i32_1 = arith.constant 0 : i32
    return %c0_i32, %c0_i32_0 : i32, i32
  }
  func.func @transform_4(%arg0: i32) -> (i32, i32) {
    %c0_i32 = arith.constant 0 : i32
    %c0_i32_0 = arith.constant 0 : i32
    %c0_i32_1 = arith.constant 0 : i32
    return %c0_i32, %c0_i32_0 : i32, i32
  }
  func.func @transform_5(%arg0: i32) -> (i32, i32) {
    %c0_i32 = arith.constant 0 : i32
    %c0_i32_0 = arith.constant 0 : i32
    %c0_i32_1 = arith.constant 0 : i32
    return %c0_i32, %c0_i32_0 : i32, i32
  }
  func.func @transform_6(%arg0: i32) -> (i32, i32) {
    %c0_i32 = arith.constant 0 : i32
    %c0_i32_0 = arith.constant 0 : i32
    %c0_i32_1 = arith.constant 0 : i32
    return %c0_i32, %c0_i32_0 : i32, i32
  }
  func.func @transform_7(%arg0: i32) -> (i32, i32, i32) {
    %c0_i32 = arith.constant 0 : i32
    %c0_i32_0 = arith.constant 0 : i32
    %c0_i32_1 = arith.constant 0 : i32
    return %arg0, %c0_i32, %c0_i32_0 : i32, i32, i32
  }
  func.func @transform_8(%arg0: i32) -> (i32, i32, i32) {
    %c0_i32 = arith.constant 0 : i32
    %c0_i32_0 = arith.constant 0 : i32
    %c0_i32_1 = arith.constant 0 : i32
    return %arg0, %c0_i32, %c0_i32_0 : i32, i32, i32
  }
  func.func @transform_9(%arg0: i32) -> (i32, i32, i32) {
    %c0_i32 = arith.constant 0 : i32
    %c0_i32_0 = arith.constant 0 : i32
    %c0_i32_1 = arith.constant 0 : i32
    return %arg0, %c0_i32, %c0_i32_0 : i32, i32, i32
  }
  func.func @transform_10(%arg0: i32) -> (i32, i32, i32) {
    %c0_i32 = arith.constant 0 : i32
    %c0_i32_0 = arith.constant 0 : i32
    %c0_i32_1 = arith.constant 0 : i32
    return %arg0, %c0_i32, %c0_i32_0 : i32, i32, i32
  }
  func.func @transform_11(%arg0: i32) -> (i32, i32, i32) {
    %c0_i32 = arith.constant 0 : i32
    %c0_i32_0 = arith.constant 0 : i32
    %c0_i32_1 = arith.constant 0 : i32
    return %arg0, %c0_i32, %c0_i32_0 : i32, i32, i32
  }
  func.func @transform_12(%arg0: i32) -> (i32, i32, i32) {
    %c0_i32 = arith.constant 0 : i32
    %c0_i32_0 = arith.constant 0 : i32
    %c0_i32_1 = arith.constant 0 : i32
    return %arg0, %c0_i32, %c0_i32_0 : i32, i32, i32
  }
  func.func @transform_13(%arg0: i32) -> (i32, i32, i32) {
    %c0_i32 = arith.constant 0 : i32
    %c0_i32_0 = arith.constant 0 : i32
    %c0_i32_1 = arith.constant 0 : i32
    return %arg0, %c0_i32, %c0_i32_0 : i32, i32, i32
  }
  func.func @transform_14(%arg0: i32) -> (i32, i32, i32) {
    %c0_i32 = arith.constant 0 : i32
    %c0_i32_0 = arith.constant 0 : i32
    %c0_i32_1 = arith.constant 0 : i32
    return %arg0, %c0_i32, %c0_i32_0 : i32, i32, i32
  }
  func.func @transform_15(%arg0: i32) -> (i32, i32, i32) {
    %c0_i32 = arith.constant 0 : i32
    %c0_i32_0 = arith.constant 0 : i32
    %c0_i32_1 = arith.constant 0 : i32
    return %arg0, %c0_i32, %c0_i32_0 : i32, i32, i32
  }
  func.func @transform_16(%arg0: i32) -> (i32, i32, i32) {
    %c0_i32 = arith.constant 0 : i32
    %c0_i32_0 = arith.constant 0 : i32
    %c0_i32_1 = arith.constant 0 : i32
    return %arg0, %c0_i32, %c0_i32_0 : i32, i32, i32
  }
  func.func @transform_17(%arg0: i32) -> (i32, i32) {
    %c0_i32 = arith.constant 0 : i32
    %c0_i32_0 = arith.constant 0 : i32
    %c0_i32_1 = arith.constant 0 : i32
    return %c0_i32, %c0_i32_0 : i32, i32
  }
  func.func @transform_18(%arg0: i32) -> (i32, i32) {
    %c0_i32 = arith.constant 0 : i32
    %c0_i32_0 = arith.constant 0 : i32
    %c0_i32_1 = arith.constant 0 : i32
    return %c0_i32, %c0_i32_0 : i32, i32
  }
}

</mosaic_0001>

<bundles_post_ra>
// kernel: run.2
= control target key start
LH: loop header
LB: loop body
LE: loop exit
PB: predicated region body
PF: predicated region fallthrough
CT: control target
= control target key end

     0   :  { %v1171_v0 = vmov 0   ;;  %v1172_v56 = vmov 683565275   ;;  %v1173_v58 = vmov 2475754826   ;;  %s1758_s3 = inlined_call_operand.vmem [shape: f32[32,1], index: 3, kind: input, shape index: {}]   ;;  %s1759_s5 = inlined_call_operand.vmem [shape: f32[16,32], index: 5, kind: input, shape index: {}]   ;;  %s1760_s7 = inlined_call_operand.vmem [shape: f32[32,3], index: 7, kind: input, shape index: {}]   ;;  %s1761_s12 = inlined_call_operand.vmem [shape: f32[32,3], index: 12, kind: output, shape index: {2}]   ;;  %s1762_s8 = inlined_call_operand.vmem [shape: s32[1,32], index: 8, kind: input, shape index: {}]   ;;  %s1763_s1 = inlined_call_operand.vmem [shape: f32[32,32], index: 1, kind: input, shape index: {}]   ;;  %s1764_s0 = inlined_call_operand.vmem [shape: f32[16,32], index: 0, kind: input, shape index: {}]   ;;  %s1765_s9 = inlined_call_operand.vmem [shape: f32[16,3], index: 9, kind: input, shape index: {}]   ;;  %s1766_s4 = inlined_call_operand.vmem [shape: f32[1,16], index: 4, kind: input, shape index: {}]   ;;  %s1767_s14 = inlined_call_operand.vmem [shape: f32[16,1], index: 14, kind: output, shape index: {4}]   ;;  %s1768_s2 = inlined_call_operand.vmem [shape: f32[1,32], index: 2, kind: input, shape index: {}]   ;;  %s1769_s10 = inlined_call_operand.vmem [shape: f32[16,32], index: 10, kind: output, shape index: {0}]   ;;  %s1770_s6 = inlined_call_operand.vmem [shape: f32[1,32], index: 6, kind: input, shape index: {}]   ;;  %s1771_s11 = inlined_call_operand.vmem [shape: f32[32,32], index: 11, kind: output, shape index: {1}]   ;;  %s1772_s13 = inlined_call_operand.vmem [shape: f32[16,3], index: 13, kind: output, shape index: {3}]  }
   0x1   :  { %1113 = vset.pattern.permute.xlu0 %v1171_v0  ;;  %v151_v1 = vld [vmem:[%s1758_s3] sm:$0xff]  ;;  %1114 = vset.pattern.permute.xlu1 %v1171_v0  ;;  %v153_v2 = vld [vmem:[%s1758_s3 + $0x10] sm:$0xff]  ;;  %v152_v3 = vld [vmem:[%s1758_s3 + $0x8] sm:$0xff]  ;;  %v1174_v60 = vmov 2131351028  }
   0x2   :  { %158 = vperm.xlu0 %1113, %v151_v1   ;;  %v187_v4 = vmul.f32 0.2, %v151_v1  ;;  %168 = vperm.xlu1 %1114, %v153_v2   ;;  %v189_v5 = vmul.f32 0.2, %v153_v2  ;;  %v188_v6 = vmul.f32 0.2, %v152_v3 }
   0x3   :  { %v154_v7 = vld [vmem:[%s1758_s3 + $0x18] sm:$0xff]  ;;  %v780_v12 = vadd.f32 1e-06, %v153_v2  ;;  %v779_v21 = vadd.f32 1e-06, %v152_v3 }
   0x4   :  { %v191_v8 = vmax.f32 %v187_v4, 0.0  ;;  %v192_v9 = vmax.f32 %v188_v6, 0.0  ;;  %v190_v10 = vmul.f32 0.2, %v154_v7  ;;  %v193_v11 = vmax.f32 %v189_v5, 0.0 }
   0x5   :  { %v781_v16 = vadd.f32 1e-06, %v154_v7  ;;  %v778_v24 = vadd.f32 1e-06, %v151_v1  ;;  %v1175_v62 = vmov 2102212464  }
   0x6   :  { %v195_v13 = vmin.f32 %v191_v8, 1.0  ;;  %v196_v14 = vmin.f32 %v192_v9, 1.0  ;;  %163 = vperm.xlu0 %1113, %v152_v3   ;;  %v194_v15 = vmax.f32 %v190_v10, 0.0  ;;  %173 = vperm.xlu1 %1114, %v154_v7   ;;  %v197_v19 = vmin.f32 %v193_v11, 1.0 }
   0x7   :  { %v1176_v0 = vmov 920167782   ;;  %v1177_v8 = vmov 1326507024  }
   0x8   :  { %v1266_v17 = vmul.f32 3.1415927, %v195_v13  ;;  %v1268_v18 = vmul.f32 3.1415927, %v196_v14  ;;  %v198_v20 = vmin.f32 %v194_v15, 1.0 }
   0x9   :  { %v1276_v30 = vmul.f32 3.1415927, %v197_v19  ;;  %v663_v19 = vld [vmem:[%s1759_s5] sm:$0xff] }
   0xa   :  { %v206_v22 = vand.u32 2139095040, %v1266_v17  ;;  %v309_v23 = vand.u32 2139095040, %v1268_v18  ;;  %799 = vperm.xlu0 %1113, %v781_v16   ;;  %794 = vperm.xlu1 %1114, %v780_v12   ;;  %v306_v25 = vand.u32 2147483647, %v1268_v18  ;;  %v1273_v26 = vmul.f32 3.1415927, %v198_v20 }
   0xb   :  { %v203_v27 = vand.u32 2147483647, %v1266_v17  ;;  %v412_v39 = vand.u32 2139095040, %v1276_v30  ;;  %v664_v16 = vld [vmem:[%s1759_s5 + $0x8] sm:$0xff] }
   0xc   :  { %v207_v28 = vshrl.u32 %v206_v22, 23  ;;  %v310_v29 = vshrl.u32 %v309_v23, 23  ;;  %v515_v31 = vand.u32 2139095040, %v1273_v26  ;;  %v313_v34 = vand.u32 8388607, %v306_v25  ;;  %1068 = vmatprep.subr.mxu1 %v664_v16 }
   0xd   :  { %v210_v35 = vand.u32 8388607, %v203_v27  ;;  %v1286_v47 = vshrl.u32 %v412_v39, 23  ;;  %1069 = vmatpush3.msra.mxu1 %v664_v16 }
   0xe   :  { %v1013_v32 = vadd.s32 4294967169, %v207_v28  ;;  %v1017_v33 = vadd.s32 4294967169, %v310_v29  ;;  %789 = vperm.xlu0 %1113, %v779_v21   ;;  %784 = vperm.xlu1 %1114, %v778_v24   ;;  %v516_v36 = vshrl.u32 %v515_v31, 23  ;;  %v314_v41 = vor.u32 8388608, %v313_v34 }
   0xf   :  { %v211_v42 = vor.u32 8388608, %v210_v35  ;;  %1070 = vmatprep.subr.mxu1 %v663_v19 }
  0x10   :  { %v213_v37 = vadd.s32 1, %v1013_v32  ;;  %v316_v38 = vadd.s32 1, %v1017_v33  ;;  %v1025_v40 = vadd.s32 4294967169, %v516_v36  ;;  %v1290_v51 = vshll.u32 %v314_v41, 8  ;;  %1071 = vmatpush3.msra.mxu1 %v663_v19 }
  0x11   :  { %v1292_v52 = vshll.u32 %v211_v42, 8 }
  0x12   :  { %vm214_vm0 = vcmp.gt.s32.totalorder %v213_v37, 0  ;;  %vm317_vm1 = vcmp.gt.s32.totalorder %v316_v38, 0  ;;  %v522_v45 = vadd.s32 1, %v1025_v40 }
  0x13   :  { %v215_v43 = vsel %vm214_vm0, %v213_v37, 0  ;;  %v318_v44 = vsel %vm317_vm1, %v316_v38, 0 }
  0x14   :  { %v1284_v46 = vand.u32 31, %v215_v43  ;;  %v320_v48 = vand.u32 31, %v318_v44  ;;  %vm523_vm2 = vcmp.gt.s32.totalorder %v522_v45, 0  ;;  %v1288_v49 = vshrl.u32 %v215_v43, 5 }
  0x15   :  { %v319_v50 = vshrl.u32 %v318_v44, 5  ;;  %v1297_v55 = vsel %vm523_vm2, %v522_v45, 0 }
  0x16   :  { %v1295_v53 = vsub.s32 32, %v1284_v46  ;;  %v321_v54 = vsub.s32 32, %v320_v48  ;;  %v323_v57 = vshll.u32 %v1172_v56, %v320_v48  ;;  %v326_v59 = vshll.u32 %v1173_v58, %v320_v48 }
  0x17   :  { %v329_v61 = vshll.u32 %v1174_v60, %v320_v48  ;;  %v332_v63 = vshll.u32 %v1175_v62, %v320_v48  ;;  %v335_v1 = vshll.u32 %v1176_v0, %v320_v48  ;;  %v220_v5 = vshll.u32 %v1172_v56, %v1284_v46 }
  0x18   :  { %v322_v2 = vshrl.u32 %v1172_v56, %v321_v54  ;;  %v324_v3 = vshrl.u32 %v1173_v58, %v321_v54  ;;  %v327_v4 = vshrl.u32 %v1174_v60, %v321_v54  ;;  %v330_v6 = vshrl.u32 %v1175_v62, %v321_v54 }
  0x19   :  { %v333_v7 = vshrl.u32 %v1176_v0, %v321_v54  ;;  %v336_v9 = vshrl.u32 %v1177_v8, %v321_v54  ;;  %vm338_vm3 = vcmp.lt.s32.totalorder %v319_v50, 1  ;;  %v1313_v10 = vand.u32 31, %v1297_v55 }
  0x1a   :  { %v325_v11 = vor.u32 %v324_v3, %v323_v57  ;;  %v328_v12 = vor.u32 %v327_v4, %v326_v59  ;;  %vm340_vm4 = vcmp.lt.s32.totalorder %v319_v50, 3  ;;  %v331_v13 = vor.u32 %v330_v6, %v329_v61 }
  0x1b   :  { %v334_v14 = vor.u32 %v333_v7, %v332_v63  ;;  %v337_v15 = vor.u32 %v336_v9, %v335_v1  ;;  %vm341_vm5 = vcmp.lt.s32.totalorder %v319_v50, 4  ;;  %vm339_vm6 = vcmp.lt.s32.totalorder %v319_v50, 2 }
  0x1c   :  { %v342_v20 = vsel %vm338_vm3, %v322_v2, %v325_v11  ;;  %v346_v21 = vsel %vm338_vm3, %v325_v11, %v328_v12  ;;  %v221_v22 = vshrl.u32 %v1173_v58, %v1295_v53  ;;  %v343_v23 = vsel %vm341_vm5, %v331_v13, 2102212464 }
  0x1d   :  { %v347_v24 = vsel %vm341_vm5, %v334_v14, 920167782  ;;  %v350_v28 = vsel %vm338_vm3, %v328_v12, %v331_v13  ;;  %v351_v29 = vsel %vm341_vm5, %v337_v15, 1326507024  ;;  %v344_v31 = vsel %vm340_vm4, %v328_v12, %v343_v23 }
  0x1e   :  { %v348_v32 = vsel %vm340_vm4, %v331_v13, %v347_v24  ;;  %v352_v33 = vsel %vm340_vm4, %v334_v14, %v351_v29  ;;  %v219_v34 = vshrl.u32 %v1172_v56, %v1295_v53  ;;  %v345_v35 = vsel %vm339_vm6, %v342_v20, %v344_v31 }
  0x1f   :  { %v349_v36 = vsel %vm339_vm6, %v346_v21, %v348_v32  ;;  %v353_v37 = vsel %vm339_vm6, %v350_v28, %v352_v33  ;;  %v223_v38 = vshll.u32 %v1173_v58, %v1284_v46  ;;  %v222_v43 = vor.u32 %v221_v22, %v220_v5 }
  0x20   :  { %v1337_v39 = vmul.u32.u64.low %v1290_v51, %v353_v37  ;;  %v1338_v40 = vmul.u32.u64.high %v1290_v51, %v353_v37, %v1337_v39  ;;  %v1341_v41 = vmul.u32.u64.low %v1290_v51, %v349_v36  ;;  %v1342_v42 = vmul.u32.u64.high %v1290_v51, %v349_v36, %v1341_v41 }
  0x21   :  { %v224_v44 = vshrl.u32 %v1174_v60, %v1295_v53  ;;  %v226_v45 = vshll.u32 %v1174_v60, %v1284_v46  ;;  %v227_v48 = vshrl.u32 %v1175_v62, %v1295_v53  ;;  %v229_v50 = vshll.u32 %v1175_v62, %v1284_v46 }
  0x22   :  { %v230_v54 = vshrl.u32 %v1176_v0, %v1295_v53  ;;  %v232_v57 = vshll.u32 %v1176_v0, %v1284_v46  ;;  %v233_v59 = vshrl.u32 %v1177_v8, %v1295_v53  ;;  %v361_v61 = vmul.u32 %v1290_v51, %v345_v35 }
  0x23   :  { %v225_v63 = vor.u32 %v224_v44, %v223_v38  ;;  %v228_v1 = vor.u32 %v227_v48, %v226_v45  ;;  %vm235_vm7 = vcmp.lt.s32.totalorder %v1288_v49, 1  ;;  %vm363_vm8 = vc.u32 %v1338_v40, %v1341_v41 }
  0x24   :  { %v364_v2 = vadd.s32 1, %v1342_v42  ;;  %v231_v3 = vor.u32 %v230_v54, %v229_v50  ;;  %vm236_vm9 = vcmp.lt.s32.totalorder %v1288_v49, 2  ;;  %v234_v4 = vor.u32 %v233_v59, %v232_v57 }
  0x25   :  { %vm237_vm10 = vcmp.lt.s32.totalorder %v1288_v49, 3  ;;  %vm238_vm11 = vcmp.lt.s32.totalorder %v1288_v49, 4  ;;  %v239_v46 = vsel %vm235_vm7, %v219_v34, %v222_v43  ;;  %v243_v5 = vsel %vm235_vm7, %v222_v43, %v225_v63 }
  0x26   :  { %v365_v51 = vsel %vm363_vm8, %v364_v2, %v1342_v42  ;;  %v240_v53 = vsel %vm238_vm11, %v228_v1, 2102212464  ;;  %v244_v6 = vsel %vm238_vm11, %v231_v3, 920167782  ;;  %v247_v12 = vsel %vm235_vm7, %v225_v63, %v228_v1 }
  0x27   :  { %v366_v7 = vadd.s32 %v365_v51, %v361_v61  ;;  %v241_v9 = vsel %vm237_vm10, %v225_v63, %v240_v53  ;;  %v245_v11 = vsel %vm237_vm10, %v228_v1, %v244_v6  ;;  %v527_v13 = vsub.s32 32, %v1313_v10 }
  0x28   :  { %v246_v14 = vsel %vm236_vm9, %v243_v5, %v245_v11  ;;  %v248_v15 = vsel %vm238_vm11, %v234_v4, 1326507024  ;;  %v1021_v22 = vadd.s32 4294967169, %v1286_v47  ;;  %v242_v23 = vsel %vm236_vm9, %v239_v46, %v241_v9 }
  0x29   :  { %v367_v16 = vadd.s32 536870912, %v366_v7  ;;  %v249_v19 = vsel %vm237_vm10, %v231_v3, %v248_v15  ;;  %v1378_v20 = vmul.u32.u64.low %v1292_v52, %v246_v14  ;;  %v1379_v21 = vmul.u32.u64.high %v1292_v52, %v246_v14, %v1378_v20 }
  0x2a   :  { %v250_v24 = vsel %vm236_vm9, %v247_v12, %v249_v19  ;;  %v512_v32 = vand.u32 2147483647, %v1273_v26  ;;  %v529_v33 = vshll.u32 %v1172_v56, %v1313_v10  ;;  %v530_v34 = vshrl.u32 %v1173_v58, %v527_v13 }
  0x2b   :  { %v1387_v28 = vshrl.u32 %v367_v16, 30  ;;  %v1390_v29 = vmul.u32.u64.low %v1292_v52, %v250_v24  ;;  %v1391_v31 = vmul.u32.u64.high %v1292_v52, %v250_v24, %v1390_v29  ;;  %v532_v47 = vshll.u32 %v1173_v58, %v1313_v10 }
  0x2c   :  { %v533_v35 = vshrl.u32 %v1174_v60, %v527_v13  ;;  %v525_v49 = vshrl.u32 %v1297_v55, 5  ;;  %v258_v37 = vmul.u32 %v1292_v52, %v242_v23  ;;  %v261_v38 = vadd.s32 1, %v1379_v21 }
  0x2d   :  { %v369_v36 = vshll.u32 %v1387_v28, 30  ;;  %v535_v39 = vshll.u32 %v1174_v60, %v1313_v10  ;;  %v536_v42 = vshrl.u32 %v1175_v62, %v527_v13  ;;  %v538_v43 = vshll.u32 %v1175_v62, %v1313_v10 }
  0x2e   :  { %v539_v44 = vshrl.u32 %v1176_v0, %v527_v13  ;;  %v419_v45 = vadd.s32 1, %v1021_v22  ;;  %vm260_vm12 = vc.u32 %v1391_v31, %v1378_v20  ;;  %v519_v52 = vand.u32 8388607, %v512_v32 }
  0x2f   :  { %v370_v48 = vsub.s32 %v366_v7, %v369_v36  ;;  %v262_v55 = vsel %vm260_vm12, %v261_v38, %v1379_v21  ;;  %v531_v50 = vor.u32 %v530_v34, %v529_v33  ;;  %v534_v54 = vor.u32 %v533_v35, %v532_v47 }
  0x30   :  { %v541_v57 = vshll.u32 %v1176_v0, %v1313_v10  ;;  %v263_v61 = vadd.s32 %v262_v55, %v258_v37  ;;  %v540_v63 = vor.u32 %v539_v44, %v538_v43  ;;  %v542_v1 = vshrl.u32 %v1177_v8, %v527_v13 }
  0x31   :  { %v372_v59 = vsub.s32 0, %v370_v48  ;;  %v537_v2 = vor.u32 %v536_v42, %v535_v39  ;;  %vm544_vm13 = vcmp.lt.s32.totalorder %v525_v49, 1  ;;  %vm547_vm14 = vcmp.lt.s32.totalorder %v525_v49, 4 }
  0x32   :  { %vm420_vm15 = vcmp.gt.s32.totalorder %v419_v45, 0  ;;  %v520_v4 = vor.u32 8388608, %v519_v52  ;;  %vm546_vm0 = vcmp.lt.s32.totalorder %v525_v49, 3  ;;  %v264_v46 = vadd.s32 536870912, %v263_v61 }
  0x33   :  { %v1018_v3 = vmin.u32 %v372_v59, %v370_v48  ;;  %v528_v51 = vshrl.u32 %v1172_v56, %v527_v13  ;;  %v543_v53 = vor.u32 %v542_v1, %v541_v57  ;;  %vm545_vm1 = vcmp.lt.s32.totalorder %v525_v49, 2 }
  0x34   :  { %v549_v10 = vsel %vm547_vm14, %v537_v2, 2102212464  ;;  %v552_v6 = vsel %vm544_vm13, %v531_v50, %v534_v54  ;;  %v553_v7 = vsel %vm547_vm14, %v540_v63, 920167782  ;;  %v362_v9 = vadd.s32 %v1341_v41, %v1338_v40 }
  0x35   :  { %v374_v5 = vclz %v1018_v3  ;;  %v1424_v11 = vshrl.u32 %v264_v46, 30  ;;  %v554_v12 = vsel %vm546_vm0, %v537_v2, %v553_v7  ;;  %v556_v14 = vsel %vm544_vm13, %v534_v54, %v537_v2 }
  0x36   :  { %v555_v13 = vsel %vm545_vm1, %v552_v6, %v554_v12  ;;  %v557_v16 = vsel %vm547_vm14, %v543_v53, 1326507024  ;;  %v560_v19 = vshll.u32 %v520_v4, 8  ;;  %v548_v22 = vsel %vm544_vm13, %v528_v51, %v531_v50 }
  0x37   :  { %v1019_v15 = vadd.s32 4294967294, %v374_v5  ;;  %v266_v21 = vshll.u32 %v1424_v11, 30  ;;  %v550_v23 = vsel %vm546_vm0, %v534_v54, %v549_v10  ;;  %v558_v40 = vsel %vm546_vm0, %v540_v63, %v557_v16 }
  0x38   :  { %v559_v41 = vsel %vm545_vm1, %v556_v14, %v558_v40  ;;  %v1435_v24 = vmul.u32.u64.low %v560_v19, %v555_v13  ;;  %v1436_v29 = vmul.u32.u64.high %v560_v19, %v555_v13, %v1435_v24  ;;  %v421_v33 = vsel %vm420_vm15, %v419_v45, 0 }
  0x39   :  { %vm1020_vm2 = vcmp.lt.s32.totalorder %v1019_v15, 0  ;;  %v267_v47 = vsub.s32 %v263_v61, %v266_v21  ;;  %v551_v38 = vsel %vm545_vm1, %v548_v22, %v550_v23  ;;  %v423_v44 = vand.u32 31, %v421_v33 }
  0x3a   :  { %v377_v34 = vsel %vm1020_vm2, 0, %v1019_v15  ;;  %v1441_v42 = vmul.u32.u64.low %v560_v19, %v559_v41  ;;  %v1442_v43 = vmul.u32.u64.high %v560_v19, %v559_v41, %v1441_v42  ;;  %v570_v50 = vadd.s32 1, %v1436_v29 }
  0x3b   :  { %v378_v35 = vsub.s32 32, %v377_v34  ;;  %v379_v36 = vshll.u32 %v370_v48, %v377_v34  ;;  %v382_v37 = vsub.s32 4294967266, %v377_v34  ;;  %v269_v39 = vsub.s32 0, %v267_v47 }
  0x3c   :  { %v567_v57 = vmul.u32 %v560_v19, %v551_v38  ;;  %v392_v61 = vsub.s32 4, %v1387_v28  ;;  %v409_v48 = vand.u32 2147483647, %v1276_v30  ;;  %vm308_vm3 = vcmp.lt.s32.totalorder %v1268_v18, 0 }
  0x3d   :  { %v380_v52 = vshrl.u32 %v362_v9, %v378_v35  ;;  %v383_v55 = vadd.s32 127, %v382_v37  ;;  %v1014_v54 = vmin.u32 %v269_v39, %v267_v47  ;;  %vm569_vm4 = vc.u32 %v1442_v43, %v1435_v24 }
  0x3e   :  { %v424_v63 = vsub.s32 32, %v423_v44  ;;  %v571_v3 = vsel %vm569_vm4, %v570_v50, %v1436_v29  ;;  %v1451_v4 = vshrl.u32 %v421_v33, 5  ;;  %vm1455_vm5 = vcmp.le.f32.partialorder %v306_v25, 0.7853982 }
  0x3f   :  { %v381_v59 = vor.u32 %v380_v52, %v379_v36  ;;  %v384_v45 = vshll.u32 %v383_v55, 23  ;;  %v271_v49 = vclz %v1014_v54  ;;  %v572_v53 = vadd.s32 %v571_v3, %v567_v57 }
  0x40   :  { %v393_v10 = vsel %vm308_vm3, %v392_v61, %v1387_v28  ;;  %v259_v6 = vadd.s32 %v1378_v20, %v1391_v31  ;;  %v1466_v7 = vand.u32 8388607, %v409_v48  ;;  %v425_v25 = vshrl.u32 %v1172_v56, %v424_v63 }
  0x41   :  { %v385_v1 = vor.u32 4788187, %v384_v45  ;;  %v388_v2 = vcvt.s32.f32 %v381_v59  ;;  %v1015_v51 = vadd.s32 4294967294, %v271_v49  ;;  %v573_v9 = vadd.s32 536870912, %v572_v53 }
  0x42   :  { %v426_v12 = vshll.u32 %v1172_v56, %v423_v44  ;;  %v427_v13 = vshrl.u32 %v1173_v58, %v424_v63  ;;  %v429_v16 = vshll.u32 %v1173_v58, %v423_v44  ;;  %v430_v22 = vshrl.u32 %v1174_v60, %v424_v63 }
  0x43   :  { %v386_v5 = vand.u32 2147483647, %v385_v1  ;;  %vm1016_vm6 = vcmp.lt.s32.totalorder %v1015_v51, 0  ;;  %v1472_v20 = vshrl.u32 %v573_v9, 30  ;;  %v435_v23 = vshll.u32 %v1175_v62, %v423_v44 }
  0x44   :  { %v274_v15 = vsel %vm1016_vm6, 0, %v1015_v51  ;;  %v436_v40 = vshrl.u32 %v1176_v0, %v424_v63  ;;  %v432_v33 = vshll.u32 %v1174_v60, %v423_v44  ;;  %vm205_vm7 = vcmp.lt.s32.totalorder %v1266_v17, 0 }
  0x45   :  { %v389_v14 = vmul.f32 %v388_v2, %v386_v5  ;;  %v275_v28 = vsub.s32 32, %v274_v15  ;;  %v276_v19 = vshll.u32 %v267_v47, %v274_v15  ;;  %v279_v21 = vsub.s32 4294967266, %v274_v15 }
  0x46   :  { %v575_v29 = vshll.u32 %v1472_v20, 30  ;;  %v433_v34 = vshrl.u32 %v1175_v62, %v424_v63  ;;  %v438_v47 = vshll.u32 %v1176_v0, %v423_v44  ;;  %v439_v35 = vshrl.u32 %v1177_v8, %v424_v63 }
  0x47   :  { %v390_v31 = vxor.u32 2147483648, %v389_v14  ;;  %v277_v41 = vshrl.u32 %v259_v6, %v275_v28  ;;  %v280_v56 = vadd.s32 127, %v279_v21  ;;  %vm1490_vm8 = vcmp.le.f32.partialorder %v203_v27, 0.7853982 }
  0x48   :  { %v1494_v39 = vsub.s32 %v572_v53, %v575_v29  ;;  %v428_v62 = vor.u32 %v427_v13, %v426_v12  ;;  %v431_v42 = vor.u32 %v430_v22, %v429_v16  ;;  %v437_v0 = vor.u32 %v436_v40, %v435_v23 }
  0x49   :  { %v391_v58 = vsel %vm308_vm3, %v390_v31, %v389_v14  ;;  %v278_v60 = vor.u32 %v277_v41, %v276_v19  ;;  %v281_v38 = vshll.u32 %v280_v56, 23  ;;  %v434_v55 = vor.u32 %v433_v34, %v432_v33 }
  0x4a   :  { %v394_v36 = vsel %vm1455_vm5, %v1268_v18, %v391_v58  ;;  %v578_v52 = vsub.s32 0, %v1494_v39  ;;  %v440_v50 = vor.u32 %v439_v35, %v438_v47  ;;  %vm441_vm9 = vcmp.lt.s32.totalorder %v1451_v4, 1 }
  0x4b   :  { %1115 = vcosq.f32 %v394_v36  ;;  %v282_v8 = vor.u32 4788187, %v281_v38  ;;  %v285_v44 = vcvt.s32.f32 %v278_v60  ;;  %vm444_vm10 = vcmp.lt.s32.totalorder %v1451_v4, 4 }
  0x4c   :  { %1117 = vsinq.f32 %v394_v36  ;;  %v395_v27 = vsel %vm1455_vm5, 0, %v393_v10  ;;  %v1026_v57 = vmin.u32 %v578_v52, %v1494_v39  ;;  %vm443_vm11 = vcmp.lt.s32.totalorder %v1451_v4, 3 }
  0x4d   :  { %v283_v54 = vand.u32 2147483647, %v282_v8  ;;  %v417_v59 = vor.u32 8388608, %v1466_v7  ;;  %vm442_vm12 = vcmp.lt.s32.totalorder %v1451_v4, 2  ;;  %v446_v45 = vsel %vm444_vm10, %v434_v55, 2102212464 }
  0x4e   :  { %v450_v61 = vsel %vm444_vm10, %v437_v0, 920167782  ;;  %v580_v63 = vclz %v1026_v57  ;;  %v445_v1 = vsel %vm441_vm9, %v425_v25, %v428_v62  ;;  %v449_v2 = vsel %vm441_vm9, %v428_v62, %v431_v42 }
  0x4f   :  { %v286_v49 = vmul.f32 %v285_v44, %v283_v54  ;;  %v447_v3 = vsel %vm443_vm11, %v431_v42, %v446_v45  ;;  %v451_v46 = vsel %vm443_vm11, %v434_v55, %v450_v61  ;;  %v453_v51 = vsel %vm441_vm9, %v431_v42, %v434_v55 }
  0x50   :  { %v454_v53 = vsel %vm444_vm10, %v440_v50, 1326507024  ;;  %v399_v5 = vand.u32 3, %v395_v27  ;;  %v289_v6 = vsub.s32 4, %v1424_v11  ;;  %v1027_v7 = vadd.s32 4294967294, %v580_v63 }
  0x51   :  { %v287_v10 = vxor.u32 2147483648, %v286_v49  ;;  %v568_v9 = vadd.s32 %v1435_v24, %v1442_v43  ;;  %v448_v25 = vsel %vm442_vm12, %v445_v1, %v447_v3  ;;  %v455_v12 = vsel %vm443_vm11, %v437_v0, %v454_v53 }
  0x52   :  { %v457_v14 = vshll.u32 %v417_v59, 8  ;;  %vm1028_vm13 = vcmp.lt.s32.totalorder %v1027_v7, 0  ;;  %v452_v13 = vsel %vm442_vm12, %v449_v2, %v451_v46  ;;  %v456_v16 = vsel %vm442_vm12, %v453_v51, %v455_v12 }
  0x53   :  { %v288_v15 = vsel %vm205_vm7, %v287_v10, %v286_v49  ;;  %v583_v43 = vsel %vm1028_vm13, 0, %v1027_v7  ;;  %vm400_vm14 = vcmp.lt.s32.totalorder %v399_v5, 2  ;;  %vm404_vm15 = vcmp.eq.s32.totalorder %v399_v5, 2 }
  0x54   :  { %v291_v24 = vsel %vm1490_vm8, %v1266_v17, %v288_v15  ;;  %v1537_v28 = vmul.u32.u64.low %v457_v14, %v456_v16  ;;  %v1538_v19 = vmul.u32.u64.high %v457_v14, %v456_v16, %v1537_v28  ;;  %v584_v21 = vsub.s32 32, %v583_v43 }
  0x55   :  { %1119 = vcosq.f32 %v291_v24  ;;  %v585_v31 = vshll.u32 %v1494_v39, %v583_v43  ;;  %v588_v22 = vsub.s32 4294967266, %v583_v43  ;;  %vm401_vm0 = vcmp.eq.s32.totalorder %v399_v5, 0 }
  0x56   :  { %1121 = vsinq.f32 %v291_v24  ;;  %v1541_v23 = vmul.u32.u64.low %v457_v14, %v452_v13  ;;  %v1542_v40 = vmul.u32.u64.high %v457_v14, %v452_v13, %v1541_v23  ;;  %v586_v41 = vshrl.u32 %v568_v9, %v584_v21 }
  0x57   :  { %v589_v56 = vadd.s32 127, %v588_v22  ;;  %v290_v58 = vsel %vm205_vm7, %v289_v6, %v1424_v11  ;;  %v464_v34 = vmul.u32 %v457_v14, %v448_v25  ;;  %vm398_vm2 = vweird.f32 %v1268_v18 }
  0x58   :  { %v1116_v4 = vpop.eup %1115  ;;  %v587_v35 = vor.u32 %v586_v41, %v585_v31  ;;  %vm466_vm1 = vc.u32 %v1538_v19, %v1541_v23  ;;  %v467_v38 = vadd.s32 1, %v1542_v40  ;;  %v292_v62 = vsel %vm1490_vm8, 0, %v290_v58 }
  0x59   :  { %v1118_v29 = vpop.eup %1117  ;;  %v405_v33 = vxor.u32 2147483648, %v1116_v4  ;;  %v590_v36 = vshll.u32 %v589_v56, 23  ;;  %v296_v27 = vand.u32 3, %v292_v62  ;;  %vm514_vm3 = vcmp.lt.s32.totalorder %v1273_v26, 0 }
  0x5a   :  { %v402_v47 = vxor.u32 2147483648, %v1118_v29  ;;  %v594_v0 = vcvt.s32.f32 %v587_v35  ;;  %v468_v8 = vsel %vm466_vm1, %v467_v38, %v1542_v40  ;;  %vm1559_vm4 = vcmp.le.f32.partialorder %v512_v32, 0.7853982 }
  0x5b   :  { %v406_v60 = vsel %vm404_vm15, %v405_v33, %v1118_v29  ;;  %v591_v42 = vor.u32 4788187, %v590_v36  ;;  %v469_v55 = vadd.s32 %v468_v8, %v464_v34  ;;  %vm301_vm5 = vcmp.eq.s32.totalorder %v296_v27, 2 }
  0x5c   :  { %v403_v39 = vsel %vm401_vm0, %v1116_v4, %v402_v47  ;;  %vm298_vm6 = vcmp.eq.s32.totalorder %v296_v27, 0  ;;  %vm297_vm7 = vcmp.lt.s32.totalorder %v296_v27, 2  ;;  %v598_v32 = vsub.s32 4, %v1472_v20 }
  0x5d   :  { %v407_v11 = vsel %vm400_vm14, %v403_v39, %v406_v60  ;;  %v592_v52 = vand.u32 2147483647, %v591_v42  ;;  %v470_v18 = vadd.s32 536870912, %v469_v55  ;;  %vm295_vm8 = vweird.f32 %v1266_v17 }
  0x5e   :  { %v408_v44 = vsel %vm398_vm2, nan, %v407_v11  ;;  %v599_v9 = vsel %vm514_vm3, %v598_v32, %v1472_v20  ;;  %v465_v24 = vadd.s32 %v1541_v23, %v1538_v19  ;;  %vm604_vm13 = vweird.f32 %v1273_v26 }
  0x5f   :  { %v616_v50 = vadd.f32 1.0, %v408_v44  ;;  %v595_v54 = vmul.f32 %v594_v0, %v592_v52  ;;  %v1563_v45 = vshrl.u32 %v470_v18, 30  ;;  %v601_v15 = vsel %vm1559_vm4, 0, %v599_v9  ;;  %v774_v9 = vld [vmem:[%s1760_s7] sm:$0xff] }
  0x60   :  { %v605_v16 = vand.u32 3, %v601_v15  ;;  %vm411_vm14 = vcmp.lt.s32.totalorder %v1276_v30, 0  ;;  %vm1588_vm15 = vcmp.le.f32.partialorder %v409_v48, 0.7853982 }
  0x61   :  { %v620_v57 = vmul.f32 0.5, %v616_v50  ;;  %v596_v59 = vxor.u32 2147483648, %v595_v54  ;;  %v472_v2 = vshll.u32 %v1563_v45, 30  ;;  %v495_v52 = vsub.s32 4, %v1563_v45 }
  0x62   :  { %v1120_v61 = vpop.eup %1119  ;;  %vm610_vm10 = vcmp.eq.s32.totalorder %v605_v16, 2  ;;  %vm607_vm11 = vcmp.eq.s32.totalorder %v605_v16, 0  ;;  %vm606_vm12 = vcmp.lt.s32.totalorder %v605_v16, 2  ;;  %v1034_v16 = vld [vmem:[%s1762_s8] ss:$0 sm:$0xff] }
  0x63   :  { %646 = vperm.xlu1 %1114, %v620_v57   ;;  %v1122_v49 = vpop.eup %1121  ;;  %v302_v63 = vxor.u32 2147483648, %v1120_v61  ;;  %v597_v1 = vsel %vm514_vm3, %v596_v59, %v595_v54  ;;  %v473_v53 = vsub.s32 %v469_v55, %v472_v2  ;;  %v496_v48 = vsel %vm411_vm14, %v495_v52, %v1563_v45 }
  0x64   :  { %v299_v3 = vxor.u32 2147483648, %v1122_v49  ;;  %v600_v46 = vsel %vm1559_vm4, %v1273_v26, %v597_v1  ;;  %v498_v54 = vsel %vm1588_vm15, 0, %v496_v48  ;;  %vm501_vm3 = vweird.f32 %v1276_v30  ;;  %v777_v1 = vld [vmem:[%s1760_s7 + $0x18] sm:$0xff] }
  0x65   :  { %v303_v51 = vsel %vm301_vm5, %v302_v63, %v1122_v49  ;;  %1123 = vcosq.f32 %v600_v46  ;;  %v475_v6 = vsub.s32 0, %v473_v53  ;;  %v502_v37 = vand.u32 3, %v498_v54 }
  0x66   :  { %v300_v5 = vsel %vm298_vm6, %v1120_v61, %v299_v3  ;;  %1125 = vsinq.f32 %v600_v46  ;;  %v776_v3 = vld [vmem:[%s1760_s7 + $0x10] sm:$0xff]  ;;  %vm810_vm4 = vcmask 23552   ;;  %vm53_vm6 = vcmask 261120  }
  0x67   :  { %v304_v10 = vsel %vm297_vm7, %v300_v5, %v303_v51  ;;  %v1022_v12 = vmin.u32 %v475_v6, %v473_v53  ;;  %vm507_vm0 = vcmp.eq.s32.totalorder %v502_v37, 2  ;;  %vm504_vm1 = vcmp.eq.s32.totalorder %v502_v37, 0 }
  0x68   :  { %v305_v7 = vsel %vm295_vm8, nan, %v304_v10  ;;  %vm503_vm2 = vcmp.lt.s32.totalorder %v502_v37, 2  ;;  %v815_v10 = vlaneseq  ;;  %vm672_vm8 = vcmask 130048  }
  0x69   :  { %v615_v25 = vadd.f32 1.0, %v305_v7  ;;  %v477_v13 = vclz %v1022_v12  ;;  %v775_v7 = vld [vmem:[%s1760_s7 + $0x8] sm:$0xff] }
  0x6b   :  { %v619_v14 = vmul.f32 0.5, %v615_v25  ;;  %v1023_v17 = vadd.s32 4294967294, %v477_v13  ;;  %v816_v25 = vshrl.u32 %v815_v10, 7 }
  0x6d   :  { %641 = vperm.xlu0 %1113, %v619_v14   ;;  %vm1024_vm9 = vcmp.lt.s32.totalorder %v1023_v17, 0  ;;  %vm823_vm7 = vcmp.eq.s32.totalorder %v816_v25, %v1034_v16 }
  0x6e   :  { %v480_v43 = vsel %vm1024_vm9, 0, %v1023_v17  ;;  %v817_v17 = vadd.s32 8, %v816_v25  ;;  %vm839_vm9 = vcmask 7168  }
  0x6f   :  { %v481_v28 = vsub.s32 32, %v480_v43  ;;  %v482_v21 = vshll.u32 %v473_v53, %v480_v43  ;;  %v485_v31 = vsub.s32 4294967266, %v480_v43  ;;  %v1178_v43 = vmov 0.0  }
  0x70   :  { %vm824_vm5 = vcmp.eq.s32.totalorder %v817_v17, %v1034_v16 }
  0x71   :  { %v483_v4 = vshrl.u32 %v465_v24, %v481_v28  ;;  %v486_v41 = vadd.s32 127, %v485_v31  ;;  %v1648_v28 = vsel %vm824_vm5, 1.0, %v1178_v43  ;;  %v44_v31 = vld [vmem:[%s1763_s1 + $0x10] sm:$0xff] }
  0x72   :  { %v1124_v22 = vpop.eup %1123 }
  0x73   :  { %v1126_v20 = vpop.eup %1125  ;;  %v611_v40 = vxor.u32 2147483648, %v1124_v22  ;;  %v484_v33 = vor.u32 %v483_v4, %v482_v21  ;;  %v487_v58 = vshll.u32 %v486_v41, 23  ;;  %v45_v21 = vld [vmem:[%s1763_s1 + $0x18] sm:$0xff]  ;;  %v42_v4 = vld [vmem:[%s1763_s1] sm:$0xff]  ;;  %v41_v41 = vld [vmem:[%s1764_s0 + $0x8] sm:$0xff] }
  0x74   :  { %v608_v56 = vxor.u32 2147483648, %v1126_v20  ;;  %1057 = vmatprep.subr.mxu0 %v45_v21 }
  0x75   :  { %v612_v29 = vsel %vm610_vm10, %v611_v40, %v1126_v20  ;;  %v488_v34 = vor.u32 4788187, %v487_v58  ;;  %v491_v47 = vcvt.s32.f32 %v484_v33  ;;  %v40_v20 = vld [vmem:[%s1764_s0] sm:$0xff]  ;;  %1058 = vmatpush3.msra.mxu0 %v45_v21  ;;  %v43_v40 = vld [vmem:[%s1763_s1 + $0x8] sm:$0xff] }
  0x76   :  { %v609_v19 = vsel %vm607_vm11, %v1124_v22, %v608_v56  ;;  %v832_v22 = vsel %vm53_vm6, %v1648_v28, 0.0  ;;  %1065 = vmatprep.mubr.msk.f32.mxu0 %vm53_vm6, %v40_v20  ;;  %1059 = vmatprep.subr.mxu0 %v44_v31  ;;  %v1675_v56 = vld [vmem:[%s1765_s9] sm:$0xff] }
  0x77   :  { %v613_v23 = vsel %vm606_vm12, %v609_v19, %v612_v29  ;;  %v489_v60 = vand.u32 2147483647, %v488_v34  ;;  %1060 = vmatpush3.msra.mxu0 %v44_v31  ;;  %v1035_v29 = vsel %vm823_vm7, 1.0, %v1178_v43  ;;  %v949_v58 = vmul.f32 %v1675_v56, %v1675_v56  ;;  %v1683_v19 = vld [vmem:[%s1765_s9 + $0x8] sm:$0xff]  ;;  %v1029_v31 = vld [vmem:[%s1770_s6] ss:$0 sm:$0xff] }
  0x78   :  { %v614_v35 = vsel %vm604_vm13, nan, %v613_v23  ;;  %1061 = vmatprep.subr.mxu0 %v43_v40  ;;  %v829_v33 = vsel %vm53_vm6, %v1035_v29, 0.0  ;;  %v950_v34 = vmul.f32 %v1683_v19, %v1683_v19 }
  0x79   :  { %v618_v36 = vadd.f32 1.0, %v614_v35  ;;  %v492_v39 = vmul.f32 %v491_v47, %v489_v60  ;;  %1062 = vmatpush3.msra.mxu0 %v43_v40  ;;  %v951_v23 = vsel %vm810_vm4, %v949_v58, 0.0  ;;  %v1012_v35 = vld [vmem:[%s1766_s4] ss:$0 sm:$0xff] }
  0x7a   :  { %1063 = vmatprep.subr.mxu0 %v42_v4  ;;  %v954_v47 = vsel %vm810_vm4, %v950_v34, 0.0 }
  0x7b   :  { %v622_v38 = vmul.f32 0.5, %v618_v36  ;;  %v493_v0 = vxor.u32 2147483648, %v492_v39  ;;  %1064 = vmatpush3.msra.mxu0 %v42_v4 }
  0x7c   :  { %1066 = vmatmul.mubr.msk.f32.vlgmr.msra.gmra.mxu0 %vm53_vm6, %v41_v41 }
  0x7d   :  { %v1581_v62 = vpop.permute.xlu0 %158  ;;  %v1583_v42 = vpop.permute.xlu1 %168  ;;  %656 = vperm.xlu1 %1114, %v622_v38   ;;  %v494_v11 = vsel %vm411_vm14, %v493_v0, %v492_v39 }
  0x7e   :  { %v497_v55 = vsel %vm1588_vm15, %v1276_v30, %v494_v11  ;;  %v182_v60 = vsub.f32 %v1581_v62, %v1012_v35 }
  0x7f   :  { %1127 = vcosq.f32 %v497_v55 }
  0x80   :  { %1129 = vsinq.f32 %v497_v55  ;;  %v623_v39 = vmul.f32 -10.24, %v182_v60 }
  0x81   :  { %v1592_v8 = vpop.permute.xlu0 %163  ;;  %v1594_v44 = vpop.permute.xlu1 %173 }
  0x82   :  { %v183_v36 = vsub.f32 %v1592_v8, %v1012_v35  ;;  %v627_v0 = vmul.f32 %v623_v39, %v182_v60  ;;  %v185_v62 = vsub.f32 %v1594_v44, %v1012_v35  ;;  %v184_v8 = vsub.f32 %v1583_v42, %v1012_v35 }
  0x84   :  { %v624_v38 = vmul.f32 -10.24, %v183_v36  ;;  %v631_v52 = vmul.f32 1.442695, %v627_v0  ;;  %v625_v37 = vmul.f32 -10.24, %v184_v8 }
  0x85   :  { %v800_v50 = vpop.permute.xlu0 %799  ;;  %v795_v27 = vpop.permute.xlu1 %794 }
  0x86   :  { %1131 = vrcp.f32 %v800_v50  ;;  %v628_v26 = vmul.f32 %v624_v38, %v183_v36 }
  0x87   :  { %1133 = vrcp.f32 %v795_v27 }
  0x88   :  { %v633_v11 = vmul.f32 1.442695, %v628_v26 }
  0x89   :  { %v790_v18 = vpop.permute.xlu0 %789  ;;  %v785_v57 = vpop.permute.xlu1 %784 }
  0x8a   :  { %1135 = vrcp.f32 %v790_v18 }
  0x8b   :  { %1137 = vrcp.f32 %v785_v57  ;;  %v626_v57 = vmul.f32 -10.24, %v185_v62 }
  0x8c   :  { %v1128_v59 = vpop.eup %1127  ;;  %1139 = vpow2.f32 %v633_v11 }
  0x8d   :  { %v1130_v61 = vpop.eup %1129  ;;  %v508_v49 = vxor.u32 2147483648, %v1128_v59  ;;  %1141 = vpow2.f32 %v631_v52 }
  0x8e   :  { %v505_v63 = vxor.u32 2147483648, %v1130_v61 }
  0x8f   :  { %v509_v45 = vsel %vm507_vm0, %v508_v49, %v1130_v61  ;;  %v629_v61 = vmul.f32 %v625_v37, %v184_v8 }
  0x90   :  { %v506_v2 = vsel %vm504_vm1, %v1128_v59, %v505_v63  ;;  %v630_v59 = vmul.f32 %v626_v57, %v185_v62 }
  0x91   :  { %v510_v46 = vsel %vm503_vm2, %v506_v2, %v509_v45  ;;  %v635_v63 = vmul.f32 1.442695, %v629_v61 }
  0x92   :  { %v511_v53 = vsel %vm501_vm3, nan, %v510_v46  ;;  %v637_v49 = vmul.f32 1.442695, %v630_v59 }
  0x93   :  { %v1132_v32 = vpop.eup %1131  ;;  %v617_v6 = vadd.f32 1.0, %v511_v53 }
  0x94   :  { %v1134_v51 = vpop.eup %1133  ;;  %v1610_v5 = vmul.f32 %v1132_v32, %v777_v1  ;;  %1143 = vpow2.f32 %v637_v49 }
  0x95   :  { %v1612_v30 = vmul.f32 %v1134_v51, %v776_v3  ;;  %v621_v14 = vmul.f32 0.5, %v617_v6  ;;  %1145 = vpow2.f32 %v635_v63  ;;  %v1007_v6 = vld [vmem:[%s1768_s2] ss:$0 sm:$0xff] }
  0x96   :  { %814 = vst.msk [vmem:[%s1761_s12 + $0x18] sm:$0xff] %vm810_vm4, %v1610_v5  ;;  %1078 = vmatprep.subr.mxu1 %v1610_v5 }
  0x97   :  { %v1136_v12 = vpop.eup %1135  ;;  %813 = vst.msk [vmem:[%s1761_s12 + $0x10] sm:$0xff] %vm810_vm4, %v1612_v30  ;;  %651 = vperm.xlu0 %1113, %v621_v14  }
  0x98   :  { %v1138_v15 = vpop.eup %1137  ;;  %v1631_v13 = vmul.f32 %v1136_v12, %v775_v7 }
  0x99   :  { %v1636_v24 = vmul.f32 %v1138_v15, %v774_v9  ;;  %v1140_v50 = vpop.eup %1139 }
  0x9a   :  { %812 = vst.msk [vmem:[%s1761_s12 + $0x8] sm:$0xff] %vm810_vm4, %v1631_v13  ;;  %v1142_v27 = vpop.eup %1141 }
  0x9b   :  { %811 = vst.msk [vmem:[%s1761_s12] sm:$0xff] %vm810_vm4, %v1636_v24 }
  0xa1   :  { %833 = vadd.xlane.f32.xlu1 %v832_v22  ;;  %v1144_v1 = vpop.eup %1143 }
  0xa2   :  { %v1146_v2 = vpop.eup %1145 }
  0xb6   :  { %830 = vadd.xlane.f32.xlu0 %v829_v33 }
  0xba   :  { %952 = vadd.xlane.f32.xlu0 %v951_v23 }
  0xbe   :  { %955 = vadd.xlane.f32.xlu0 %v954_v47 }
  0xde   :  { %v647_v55 = vpop.permute.xlu1 %646 }
  0xdf   :  { %v660_v48 = vmul.f32 %v1140_v50, %v647_v55 }
  0xe8   :  { %v642_v54 = vpop.permute.xlu0 %641 }
  0xe9   :  { %v659_v18 = vmul.f32 %v1142_v27, %v642_v54 }
  0xeb   :  { %1072 = vmatprep.mubr.msk.f32.mxu1 %vm672_vm8, %v659_v18 }
  0xec   :  { %1073 = vmatmul.mubr.msk.f32.vlgmr.msra.gmra.mxu1 %vm672_vm8, %v660_v48 }
  0xed   :  { %1079 = vmatpush3.msra.mxu1 %v1610_v5 }
  0xee   :  { %1080 = vmatprep.subr.mxu1 %v1612_v30 }
  0xef   :  { %1081 = vmatpush3.msra.mxu1 %v1612_v30 }
  0xf0   :  { %1082 = vmatprep.subr.mxu1 %v1631_v13 }
  0xf1   :  { %1083 = vmatpush3.msra.mxu1 %v1631_v13 }
  0xf2   :  { %1084 = vmatprep.subr.mxu1 %v1636_v24 }
  0xf3   :  { %1085 = vmatpush3.msra.mxu1 %v1636_v24 }
  0xf8   :  { %v657_v45 = vpop.permute.xlu1 %656 }
  0xf9   :  { %v662_v3 = vmul.f32 %v1144_v1, %v657_v45 }
 0x112   :  { %v652_v32 = vpop.permute.xlu0 %651 }
 0x113   :  { %v661_v46 = vmul.f32 %v1146_v2, %v652_v32 }
 0x115   :  { %1075 = vmatprep.mubr.msk.f32.mxu1 %vm672_vm8, %v661_v46 }
 0x116   :  { %1076 = vmatmul.mubr.msk.f32.gmra.mxu1 %vm672_vm8, %v662_v3 }
 0x117   :  { %1086 = vmatprep.mubr.msk.f32.mxu1 %vm53_vm6, %v1035_v29 }
 0x11a   :  { %1087 = vmatmul.mubr.msk.f32.vlgmr.msra.gmra.mxu1 %vm53_vm6, %v1648_v28 }
 0x12a   :  { %v834_v42 = vpop.xlane.xlu1 %833 }
 0x12b   :  { %v836_v44 = vmax.f32 %v834_v42, 1.0 }
 0x12d   :  { %1147 = vrcp.f32 %v836_v44 }
 0x13a   :  { %v1148_v51 = vpop.eup %1147 }
 0x13b   :  { %841 = vst.msk [vmem:[%s1767_s14 + $0x8] sm:$0xff] %vm839_vm9, %v1148_v51 }
 0x13c   :  { %v1067_v30 = vpop.f32.mrf.mxu0 }
 0x13d   :  { %v132_v7 = vadd.f32 %v1067_v30, %v1007_v6 }
 0x13e   :  { %v126_v9 = vpop.f32.mrf.mxu0 }
 0x13f   :  { %v831_v53 = vpop.xlane.xlu0 %830  ;;  %v1011_v25 = vmul.f32 -1.442695, %v132_v7  ;;  %v127_v12 = vadd.f32 %v1007_v6, %v126_v9 }
 0x140   :  { %v835_v5 = vmax.f32 %v831_v53, 1.0 }
 0x141   :  { %v1010_v14 = vmul.f32 -1.442695, %v127_v12 }
 0x142   :  { %1149 = vrcp.f32 %v835_v5 }
 0x143   :  { %1151 = vpow2.f32 %v1011_v25  ;;  %v953_v26 = vpop.xlane.xlu0 %952 }
 0x144   :  { %1153 = vpow2.f32 %v1010_v14  ;;  %vm959_vm11 = vcmp.eq.f32.partialorder %v953_v26, inf  ;;  %v962_v54 = vand.u32 2147483648, %v953_v26  ;;  %vm961_vm13 = vcmp.eq.f32.partialorder %v953_v26, 0.0 }
 0x147   :  { %v956_v0 = vpop.xlane.xlu0 %955 }
 0x148   :  { %vm966_vm10 = vcmp.eq.f32.partialorder %v956_v0, inf  ;;  %v969_v27 = vand.u32 2147483648, %v956_v0  ;;  %vm968_vm12 = vcmp.eq.f32.partialorder %v956_v0, 0.0 }
 0x14f   :  { %v1150_v10 = vpop.eup %1149 }
 0x150   :  { %840 = vst.msk [vmem:[%s1767_s14] sm:$0xff] %vm839_vm9, %v1150_v10  ;;  %v1152_v15 = vpop.eup %1151 }
 0x151   :  { %v142_v13 = vadd.f32 1.0, %v1152_v15  ;;  %v1154_v17 = vpop.eup %1153 }
 0x152   :  { %v141_v16 = vadd.f32 1.0, %v1154_v17 }
 0x153   :  { %1155 = vrcp.f32 %v142_v13 }
 0x154   :  { %1157 = vrcp.f32 %v141_v16 }
 0x155   :  { %1159 = vrsqrt.f32 %v956_v0 }
 0x156   :  { %1161 = vrsqrt.f32 %v953_v26 }
 0x160   :  { %v1156_v24 = vpop.eup %1155 }
 0x161   :  { %v148_v43 = vmul.f32 %v1156_v24, %v132_v7  ;;  %v1158_v28 = vpop.eup %1157 }
 0x162   :  { %v147_v21 = vmul.f32 %v1158_v28, %v127_v12  ;;  %v1160_v11 = vpop.eup %1159 }
 0x163   :  { %150 = vst.msk [vmem:[%s1769_s10 + $0x8] sm:$0xff] %vm53_vm6, %v148_v43  ;;  %v1162_v52 = vpop.eup %1161  ;;  %v965_v55 = vmul.f32 %v1160_v11, %v956_v0 }
 0x164   :  { %149 = vst.msk [vmem:[%s1769_s10] sm:$0xff] %vm53_vm6, %v147_v21  ;;  %v958_v50 = vmul.f32 %v1162_v52, %v953_v26 }
 0x165   :  { %v967_v48 = vsel %vm966_vm10, %v956_v0, %v965_v55 }
 0x166   :  { %v960_v18 = vsel %vm959_vm11, %v953_v26, %v958_v50  ;;  %v970_v62 = vsel %vm968_vm12, %v969_v27, %v967_v48 }
 0x167   :  { %v963_v8 = vsel %vm961_vm13, %v962_v54, %v960_v18  ;;  %v972_v57 = vmax.f32 %v970_v62, 1e-06 }
 0x168   :  { %v971_v37 = vmax.f32 %v963_v8, 1e-06 }
 0x1ac   :  { %v1074_v22 = vpop.f32.mrf.mxu1 }
 0x1ad   :  { %v757_v20 = vadd.f32 %v1074_v22, %v1029_v31 }
 0x1ae   :  { %v751_v40 = vpop.f32.mrf.mxu1 }
 0x1af   :  { %771 = vst.msk [vmem:[%s1771_s11 + $0x8] sm:$0xff] %vm53_vm6, %v757_v20  ;;  %v752_v4 = vadd.f32 %v1029_v31, %v751_v40 }
 0x1b1   :  { %770 = vst.msk [vmem:[%s1771_s11] sm:$0xff] %vm53_vm6, %v752_v4 }
 0x1d6   :  { %v1077_v41 = vpop.f32.mrf.mxu1 }
 0x1d7   :  { %v767_v29 = vadd.f32 %v1077_v41, %v1029_v31 }
 0x1d8   :  { %v761_v33 = vpop.f32.mrf.mxu1 }
 0x1d9   :  { %773 = vst.msk [vmem:[%s1771_s11 + $0x18] sm:$0xff] %vm53_vm6, %v767_v29  ;;  %v762_v58 = vadd.f32 %v1029_v31, %v761_v33 }
 0x1da   :  { %v1088_v23 = vpop.f32.mrf.mxu1 }
 0x1db   :  { %772 = vst.msk [vmem:[%s1771_s11 + $0x10] sm:$0xff] %vm53_vm6, %v762_v58  ;;  %v924_v34 = vmul.f32 %v1148_v51, %v1088_v23 }
 0x1dc   :  { %v914_v47 = vpop.f32.mrf.mxu1 }
 0x1dd   :  { %v923_v35 = vmul.f32 %v1150_v10, %v914_v47  ;;  %v926_v36 = vmul.f32 %v924_v34, %v924_v34 }
 0x1df   :  { %v930_v60 = vsel %vm810_vm4, %v926_v36, 0.0  ;;  %v925_v38 = vmul.f32 %v923_v35, %v923_v35 }
 0x1e0   :  { %931 = vadd.xlane.f32.xlu0 %v930_v60 }
 0x1e1   :  { %v927_v39 = vsel %vm810_vm4, %v925_v38, 0.0 }
 0x1e2   :  { %928 = vadd.xlane.f32.xlu1 %v927_v39 }
 0x269   :  { %v932_v59 = vpop.xlane.xlu0 %931 }
 0x26a   :  { %1163 = vrsqrt.f32 %v932_v59  ;;  %vm942_vm14 = vcmp.eq.f32.partialorder %v932_v59, inf  ;;  %v945_v2 = vand.u32 2147483648, %v932_v59  ;;  %vm944_vm15 = vcmp.eq.f32.partialorder %v932_v59, 0.0 }
 0x26b   :  { %1165 = vrcp.f32 %v972_v57  ;;  %v929_v61 = vpop.xlane.xlu1 %928 }
 0x26c   :  { %1167 = vrsqrt.f32 %v929_v61  ;;  %vm935_vm0 = vcmp.eq.f32.partialorder %v929_v61, inf  ;;  %v938_v51 = vand.u32 2147483648, %v929_v61  ;;  %vm937_vm2 = vcmp.eq.f32.partialorder %v929_v61, 0.0 }
 0x26d   :  { %1169 = vrcp.f32 %v971_v37 }
 0x277   :  { %v1164_v49 = vpop.eup %1163 }
 0x278   :  { %v1166_v63 = vpop.eup %1165  ;;  %v941_v45 = vmul.f32 %v1164_v49, %v932_v59 }
 0x279   :  { %v1168_v1 = vpop.eup %1167  ;;  %v976_v42 = vmul.f32 %v1166_v63, %v1683_v19 }
 0x27a   :  { %v1170_v3 = vpop.eup %1169  ;;  %v943_v32 = vsel %vm942_vm14, %v932_v59, %v941_v45  ;;  %v934_v46 = vmul.f32 %v1168_v1, %v929_v61 }
 0x27b   :  { %v946_v44 = vsel %vm944_vm15, %v945_v2, %v943_v32  ;;  %v974_v6 = vmul.f32 %v1170_v3, %v1675_v56 }
 0x27c   :  { %vm978_vm1 = vcmp.eq.f32.partialorder %v946_v44, 0.0  ;;  %v936_v53 = vsel %vm935_vm0, %v929_v61, %v934_v46 }
 0x27d   :  { %v984_v5 = vsel %vm978_vm1, %v976_v42, %v924_v34  ;;  %v939_v10 = vsel %vm937_vm2, %v938_v51, %v936_v53 }
 0x27e   :  { %986 = vst.msk [vmem:[%s1772_s13 + $0x8] sm:$0xff] %vm810_vm4, %v984_v5  ;;  %vm977_vm3 = vcmp.eq.f32.partialorder %v939_v10, 0.0 }
 0x27f   :  { %v983_v30 = vsel %vm977_vm3, %v974_v6, %v923_v35 }
 0x280   :  { %985 = vst.msk [vmem:[%s1772_s13] sm:$0xff] %vm810_vm4, %v983_v30 }

// kernel: run.3
= control target key start
LH: loop header
LB: loop body
LE: loop exit
PB: predicated region body
PF: predicated region fallthrough
CT: control target
= control target key end

     0   :  { %s3729_s0 = inlined_call_operand.vmem [shape: f32[16,32], index: 0, kind: input, shape index: {}]   ;;  %s3730_s1 = inlined_call_operand.vmem [shape: f32[16,3], index: 1, kind: input, shape index: {}]   ;;  %s3731_s2 = inlined_call_operand.vmem [shape: f32[32,32], index: 2, kind: input, shape index: {}]   ;;  %s3732_s3 = inlined_call_operand.vmem [shape: f32[32,3], index: 3, kind: input, shape index: {}]   ;;  %s3733_s4 = inlined_call_operand.vmem [shape: s32[32,1], index: 4, kind: input, shape index: {}]   ;;  %s3734_s5 = inlined_call_operand.vmem [shape: s32[1,32], index: 5, kind: input, shape index: {}]   ;;  %s3735_s6 = inlined_call_operand.vmem [shape: f32[16,1], index: 6, kind: input, shape index: {}]   ;;  %s3736_s7 = inlined_call_operand.vmem [shape: f32[2,32,32], index: 7, kind: input, shape index: {}]   ;;  %s3737_s8 = inlined_call_operand.vmem [shape: f32[2,1,32], index: 8, kind: input, shape index: {}]   ;;  %s3738_s9 = inlined_call_operand.vmem [shape: f32[2,32,32], index: 9, kind: input, shape index: {}]   ;;  %s3739_s10 = inlined_call_operand.vmem [shape: f32[2,1,32], index: 10, kind: input, shape index: {}]   ;;  %s3740_s11 = inlined_call_operand.vmem [shape: f32[2,32,1], index: 11, kind: input, shape index: {}]   ;;  %s3741_s12 = inlined_call_operand.vmem [shape: f32[2,1,1], index: 12, kind: input, shape index: {}]   ;;  %s3742_s13 = inlined_call_operand.vmem [shape: f32[2,32,96], index: 13, kind: input, shape index: {}]   ;;  %s3743_s14 = inlined_call_operand.vmem [shape: f32[2,1,96], index: 14, kind: input, shape index: {}]   ;;  %s3744_s15 = inlined_call_operand.vmem [shape: f32[2,32,32], index: 15, kind: input, shape index: {}]   ;;  %s3745_s16 = inlined_call_operand.vmem [shape: f32[2,1,32], index: 16, kind: input, shape index: {}]   ;;  %s3746_s17 = inlined_call_operand.hbm [shape: f32[16,32], index: 17, kind: output, shape index: {0}]   ;;  %s3747_s18 = inlined_call_operand.vmem [shape: f32[16,3], index: 18, kind: output, shape index: {1}]  }
   0x1   :  { %3754 = sst [smem:[#allocation10_spill]] %s3729_s0 }
   0x2   :  { %3755 = sst [smem:[#allocation11_spill]] %s3730_s1 }
   0x3   :  { %3756 = sst [smem:[#allocation12_spill]] %s3731_s2 }
   0x4   :  { %3757 = sst [smem:[#allocation13_spill]] %s3732_s3 }
   0x5   :  { %3758 = sst [smem:[#allocation14_spill]] %s3736_s7 }
   0x6   :  { %3759 = sst [smem:[#allocation15_spill]] %s3738_s9 }
   0x7   :  { %3760 = sst [smem:[#allocation16_spill]] %s3740_s11 }
   0x8   :  { %3761 = sst [smem:[#allocation17_spill]] %s3746_s17 }
   0x9   :  { %3762 = sst [smem:[#allocation18_spill]] %s3747_s18 }
   0xa   :  { %24 = vsyncpa [#allocation7], 0  ;;  %s3401_s27 = smov 0  }
   0xb LB: > { %3763 = sst [smem:[#allocation9_spill]] %s3287_s27  ;;  %s3407_s28 = sadd.s32 4294967295, %s3287_s27   ;;  %s3287_s27 = sphi %s3401_s27, %s30_s27  }
   0xc   : > { %p2833_p0 = scmp.ge.s32.totalorder %s3287_s27, 1  ;;  %p586_p1 = scmp.lt.s32.totalorder %s3287_s27, 3 }
   0xe   : > { %p587_p2 = pnand %p2833_p0, %p586_p1 }
   0xf   : > { %p670_p3 = scmp.lt.s32.totalorder (!%p587_p2), %s3407_s28, 1  ;;  %s3764_s7 = sld [smem:[#allocation14_spill]] (!%p587_p2) }
  0x10   : > { %590 = sbr.rel (%p587_p2) target bundleno = 3693 (0xe6d), region = 88  ;;  %s3765_s9 = sld [smem:[#allocation15_spill]] (!%p587_p2) }
  0x11   : > { %s3766_s11 = sld [smem:[#allocation16_spill]] (!%p587_p2)  ;;  %p2844_p4 = scmp.ne.s32.totalorder (!%p587_p2), %s3407_s28, 0 }
  0x15   : > { %s3413_s29 = scalar_select %p670_p3, %s3407_s28, 1 }
  0x16   : > { %s3767_s26 = sld [smem:[#allocation10_spill]] (!%p2844_p4) }
  0x17   : > { %s2917_s30 = sshll.u32 %s3413_s29, 5  ;;  %s693_s20 = scalar_lea.vmem %s3741_s12, %s3413_s29 }
  0x18   : > { %s3423_s22 = scalar_lea.vmem %s3764_s7, %s2917_s30  ;;  %s3428_s24 = scalar_lea.vmem %s3765_s9, %s2917_s30 }
  0x19   : > { %s3437_s3 = scalar_lea.vmem %s3766_s11, %s2917_s30  ;;  %s3446_s7 = scalar_lea.vmem %s3742_s13, %s2917_s30 }
  0x1a   : > { %s701_s9 = scalar_lea.vmem %s3743_s14, %s3413_s29  ;;  %s3455_s27 = scalar_lea.vmem %s3744_s15, %s2917_s30 }
  0x1b   : > { %s709_s11 = scalar_lea.vmem %s3745_s16, %s3413_s29  ;;  %713 = sbr.rel (%p2844_p4) target bundleno = 165 (0xa5), region = 92 }
  0x1c   : > { %s3768_s23 = sld [smem:[#allocation11_spill]] (!%p2844_p4) }
  0x20   : > { %v728_v0 = vld [vmem:[%s3733_s4 + $0x10] sm:$0xff]  ;;  %v726_v1 = vld [vmem:[%s3733_s4] sm:$0xff]  ;;  %v724_v2 = vlaneseq  ;;  %v3289_v3 = vmov 0   ;;  %vm716_vm0 = vcmask 261120   ;;  %v729_v6 = vld [vmem:[%s3733_s4 + $0x18] sm:$0xff]  ;;  %vm721_vm1 = vcmask 23552  }
  0x21   : > { %3202 = vset.pattern.permute.xlu1 %v3289_v3  ;;  %3201 = vset.pattern.permute.xlu0 %v3289_v3  ;;  %v2849_v4 = vld [vmem:[%s3734_s5] ss:$0 sm:$0xff]  ;;  %v715_v7 = vld [vmem:[%s3767_s26 + $0x8] sm:$0xff]  ;;  %v3290_v13 = vmov 0.0   ;;  %vm754_vm4 = vcmask 130048  }
  0x22   : > { %v714_v5 = vld [vmem:[%s3767_s26] sm:$0xff]  ;;  %737 = vperm.xlu1 %3202, %v728_v0   ;;  %731 = vperm.xlu0 %3201, %v726_v1   ;;  %v760_v8 = vshrl.u32 %v724_v2, 7  ;;  %v727_v9 = vld [vmem:[%s3733_s4 + $0x8] sm:$0xff]  ;;  %718 = vst.msk [vmem:[#allocation2 + $0x8] sm:$0xff] %vm716_vm0, %v715_v7  ;;  %v725_v16 = vand.u32 127, %v724_v2 }
  0x23   : > { %717 = vst.msk [vmem:[#allocation2] sm:$0xff] %vm716_vm0, %v714_v5  ;;  %v719_v10 = vld [vmem:[%s3768_s23] sm:$0xff]  ;;  %v720_v11 = vld [vmem:[%s3768_s23 + $0x8] sm:$0xff] }
  0x24   : > { %v761_v12 = vadd.s32 8, %v760_v8  ;;  %vm767_vm2 = vcmp.eq.s32.totalorder %v760_v8, %v2849_v4  ;;  %722 = vst.msk [vmem:[#allocation3] sm:$0xff] %vm721_vm1, %v719_v10  ;;  %723 = vst.msk [vmem:[#allocation3 + $0x8] sm:$0xff] %vm721_vm1, %v720_v11 }
  0x25   : > { %v2850_v14 = vsel %vm767_vm2, 1.0, %v3290_v13 }
  0x26   : > { %740 = vperm.xlu1 %3202, %v729_v6   ;;  %734 = vperm.xlu0 %3201, %v727_v9   ;;  %vm768_vm3 = vcmp.eq.s32.totalorder %v761_v12, %v2849_v4  ;;  %773 = vst.msk [vmem:[#allocation5] sm:$0xff] %vm716_vm0, %v2850_v14 }
  0x27   : > { %v2851_v15 = vsel %vm768_vm3, 1.0, %v3290_v13 }
  0x28   : > { %774 = vst.msk [vmem:[#allocation5 + $0x8] sm:$0xff] %vm716_vm0, %v2851_v15 }
  0x9d   : > { %v738_v17 = vpop.permute.xlu1 %737  ;;  %v732_v18 = vpop.permute.xlu0 %731 }
  0x9e   : > { %vm744_vm5 = vcmp.eq.s32.totalorder %v725_v16, %v738_v17  ;;  %vm742_vm6 = vcmp.eq.s32.totalorder %v725_v16, %v732_v18 }
  0x9f   : > { %v2847_v19 = vsel %vm744_vm5, 1.0, %v3290_v13  ;;  %v2845_v20 = vsel %vm742_vm6, 1.0, %v3290_v13 }
  0xa0   : > { %757 = vst.msk [vmem:[#allocation4 + $0x10] sm:$0xff] %vm754_vm4, %v2847_v19  ;;  %755 = vst.msk [vmem:[#allocation4] sm:$0xff] %vm754_vm4, %v2845_v20 }
  0xa1   : > { %v741_v21 = vpop.permute.xlu1 %740  ;;  %v735_v22 = vpop.permute.xlu0 %734 }
  0xa2   : > { %vm745_vm7 = vcmp.eq.s32.totalorder %v725_v16, %v741_v21  ;;  %vm743_vm8 = vcmp.eq.s32.totalorder %v725_v16, %v735_v22 }
  0xa3   : > { %v2848_v23 = vsel %vm745_vm7, 1.0, %v3290_v13  ;;  %v2846_v24 = vsel %vm743_vm8, 1.0, %v3290_v13 }
  0xa4   : > { %758 = vst.msk [vmem:[#allocation4 + $0x18] sm:$0xff] %vm754_vm4, %v2848_v23  ;;  %756 = vst.msk [vmem:[#allocation4 + $0x8] sm:$0xff] %vm754_vm4, %v2846_v24 }
  0xa5 PF: > { %v3497_v25 = vld [vmem:[#allocation2 + $0x8] sm:$0xff]  ;;  %v3499_v26 = vld [vmem:[#allocation2] sm:$0xff]  ;;  %vm789_vm9 = vcmask 130048   ;;  %v894_v29 = vld [vmem:[%s3423_s22 + $0x18] sm:$0xff]  ;;  %s3769_s1 = sld [smem:[#allocation12_spill]]  ;;  %vm902_vm10 = vcmask 261120   ;;  %s3770_s30 = scalar_lea.vmem %s3737_s8, %s3413_s29 }
  0xa6   : > { %3012 = vmatprep.subr.mxu0 %v3497_v25  ;;  %3022 = vmatprep.subr.mxu1 %v894_v29  ;;  %v893_v32 = vld [vmem:[%s3423_s22 + $0x10] sm:$0xff]  ;;  %v892_v33 = vld [vmem:[%s3423_s22 + $0x8] sm:$0xff]  ;;  %v891_v34 = vld [vmem:[%s3423_s22] sm:$0xff]  ;;  %v3291_v53 = vmov 0   ;;  %s3771_s25 = sld [smem:[#allocation13_spill]]  ;;  %s3772_s2 = scalar_lea.vmem %s3739_s10, %s3413_s29  ;;  %vm1432_vm11 = vcmask 23552  }
  0xa7   : > { %v785_v27 = vld [vmem:[#allocation4] sm:$0xff]  ;;  %3013 = vmatpush3.msra.mxu0 %v3497_v25  ;;  %v787_v30 = vld [vmem:[#allocation4 + $0x10] sm:$0xff]  ;;  %3023 = vmatpush3.msra.mxu1 %v894_v29  ;;  %v1031_v47 = vld [vmem:[%s3437_s3 + $0x18] sm:$0xff]  ;;  %vm1537_vm12 = vcmask 64512   ;;  %s3292_s21 = smov 96   ;;  %s3296_s22 = smov 56  }
  0xa8   : > { %3016 = vmatprep.mubr.msk.f32.mxu0 %vm789_vm9, %v785_v27  ;;  %3014 = vmatprep.subr.mxu0 %v3499_v26  ;;  %v1030_v48 = vld [vmem:[%s3437_s3 + $0x10] sm:$0xff]  ;;  %v1029_v49 = vld [vmem:[%s3437_s3 + $0x8] sm:$0xff]  ;;  %v1028_v50 = vld [vmem:[%s3437_s3] sm:$0xff]  ;;  %s3294_s3 = smov 88   ;;  %s3300_s17 = smov 104  }
  0xa9   : > { %3015 = vmatpush3.msra.mxu0 %v3499_v26  ;;  %3024 = vmatprep.subr.mxu1 %v893_v32  ;;  %v1160_v51 = vld [vmem:[#allocation5] sm:$0xff]  ;;  %v1319_v54 = vld [vmem:[%s3735_s6 + $0x8] sm:$0xff]  ;;  %v1337_v21 = vld [vmem:[%s3428_s24 + $0x18] sm:$0xff]  ;;  %s3301_s18 = smov 48   ;;  %s3302_s0 = smov 40  }
  0xaa   : > { %3025 = vmatpush3.msra.mxu1 %v893_v32  ;;  %3036 = vmatprep.subr.mxu0 %v1031_v47  ;;  %v1318_v52 = vld [vmem:[%s3735_s6] sm:$0xff]  ;;  %v1161_v20 = vld [vmem:[#allocation5 + $0x8] sm:$0xff]  ;;  %v1336_v22 = vld [vmem:[%s3428_s24 + $0x10] sm:$0xff]  ;;  %p3174_p5 = scmp.eq.s32.totalorder %s3407_s28, 1 }
  0xab   : > { %v786_v28 = vld [vmem:[#allocation4 + $0x8] sm:$0xff]  ;;  %v788_v31 = vld [vmem:[#allocation4 + $0x18] sm:$0xff]  ;;  %3026 = vmatprep.subr.mxu1 %v892_v33  ;;  %v777_v36 = vld [vmem:[%s3769_s1] sm:$0xff]  ;;  %3203 = vset.pattern.permute.xlu0 %v3291_v53 }
  0xac   : > { %3017 = vmatmul.mubr.msk.f32.vlgmr.msra.gmra.mxu0 %vm789_vm9, %v786_v28  ;;  %3027 = vmatpush3.msra.mxu1 %v892_v33  ;;  %v778_v37 = vld [vmem:[%s3769_s1 + $0x8] sm:$0xff]  ;;  %v779_v42 = vld [vmem:[%s3769_s1 + $0x10] sm:$0xff]  ;;  %v780_v43 = vld [vmem:[%s3769_s1 + $0x18] sm:$0xff] }
  0xad   : > { %3019 = vmatprep.mubr.msk.f32.mxu0 %vm789_vm9, %v787_v30  ;;  %3028 = vmatprep.subr.mxu1 %v891_v34  ;;  %v2856_v55 = vld [vmem:[%s3770_s30] ss:$0 sm:$0xff]  ;;  %v1335_v23 = vld [vmem:[%s3428_s24 + $0x8] sm:$0xff]  ;;  %s3295_s30 = smov 120  }
  0xae   : > { %3029 = vmatpush3.msra.mxu1 %v891_v34  ;;  %3037 = vmatpush3.msra.mxu0 %v1031_v47  ;;  %v1334_v24 = vld [vmem:[%s3428_s24] sm:$0xff]  ;;  %s3299_s24 = smov 72  }
  0xaf   : > { %3038 = vmatprep.subr.mxu0 %v1030_v48  ;;  %3204 = vset.pattern.permute.xlu1 %v3291_v53  ;;  %v2865_v27 = vld [vmem:[%s693_s20] ss:$0 sm:$0xff]  ;;  %s3773_s20 = sld [smem:[#allocation18_spill]] }
  0xb0   : > { %3020 = vmatmul.mubr.msk.f32.gmra.mxu0 %vm789_vm9, %v788_v31  ;;  %1322 = vperm.xlu0 %3203, %v1318_v52  }
  0xb1   : > { %3039 = vmatpush3.msra.mxu0 %v1030_v48 }
  0xb2   : > { %3040 = vmatprep.subr.mxu0 %v1029_v49 }
  0xb3   : > { %3041 = vmatpush3.msra.mxu0 %v1029_v49 }
  0xb4   : > { %3042 = vmatprep.subr.mxu0 %v1028_v50  ;;  %1327 = vperm.xlu0 %3203, %v1319_v54   ;;  %v1438_v54 = vld [vmem:[%s3446_s7 + $0x18] sm:$0xff] }
  0xb5   : > { %3043 = vmatpush3.msra.mxu0 %v1028_v50  ;;  %v781_v50 = vld [vmem:[%s3771_s25] sm:$0xff] }
 0x12b   : > { %v3560_v32 = vpop.permute.xlu0 %1322 }
 0x16c   : > { %v3018_v35 = vpop.f32.mrf.mxu0 }
 0x16d   : > { %v888_v40 = vmul.f32 %v3018_v35, %v778_v37  ;;  %v1328_v37 = vpop.permute.xlu0 %1327 }
 0x16e   : > { %v868_v38 = vpop.f32.mrf.mxu0 }
 0x16f   : > { %v887_v39 = vmul.f32 %v868_v38, %v777_v36 }
 0x170   : > { %v3021_v41 = vpop.f32.mrf.mxu0 }
 0x171   : > { %3030 = vmatprep.mubr.msk.f32.mxu1 %vm902_vm10, %v887_v39  ;;  %v890_v46 = vmul.f32 %v3021_v41, %v780_v43 }
 0x172   : > { %v878_v44 = vpop.f32.mrf.mxu0  ;;  %3031 = vmatmul.mubr.msk.f32.vlgmr.msra.gmra.mxu1 %vm902_vm10, %v888_v40 }
 0x173   : > { %v889_v45 = vmul.f32 %v878_v44, %v779_v42  ;;  %v784_v42 = vld [vmem:[%s3771_s25 + $0x18] sm:$0xff] }
 0x175   : > { %3033 = vmatprep.mubr.msk.f32.mxu1 %vm902_vm10, %v889_v45  ;;  %v783_v45 = vld [vmem:[%s3771_s25 + $0x10] sm:$0xff] }
 0x176   : > { %3034 = vmatmul.mubr.msk.f32.gmra.mxu1 %vm902_vm10, %v890_v46  ;;  %v782_v46 = vld [vmem:[%s3771_s25 + $0x8] sm:$0xff] }
 0x177   : > { %3058 = vmatprep.mubr.msk.f32.mxu1 %vm902_vm10, %v1160_v51 }
 0x232   : > { %v3032_v56 = vpop.f32.mrf.mxu1 }
 0x233   : > { %v987_v57 = vadd.f32 %v3032_v56, %v2856_v55  ;;  %v1436_v56 = vld [vmem:[%s3446_s7 + $0x8] sm:$0xff] }
 0x234   : > { %v981_v58 = vpop.f32.mrf.mxu1 }
 0x235   : > { %v2862_v59 = vmul.f32 -1.442695, %v987_v57  ;;  %v982_v60 = vadd.f32 %v2856_v55, %v981_v58  ;;  %v2874_v58 = vld [vmem:[%s3772_s2] ss:$0 sm:$0xff]  ;;  %s3297_s2 = smov 80  }
 0x236   : > { %v3035_v61 = vpop.f32.mrf.mxu1 }
 0x237   : > { %3205 = vpow2.f32 %v2862_v59  ;;  %v2861_v62 = vmul.f32 -1.442695, %v982_v60  ;;  %v997_v63 = vadd.f32 %v3035_v61, %v2856_v55 }
 0x238   : > { %v991_v0 = vpop.f32.mrf.mxu1 }
 0x239   : > { %3207 = vpow2.f32 %v2861_v62  ;;  %v2864_v1 = vmul.f32 -1.442695, %v997_v63  ;;  %v992_v2 = vadd.f32 %v2856_v55, %v991_v0  ;;  %v1437_v55 = vld [vmem:[%s3446_s7 + $0x10] sm:$0xff] }
 0x23b   : > { %3209 = vpow2.f32 %v2864_v1  ;;  %v2863_v3 = vmul.f32 -1.442695, %v992_v2 }
 0x23d   : > { %3211 = vpow2.f32 %v2863_v3 }
 0x244   : > { %v3206_v4 = vpop.eup %3205 }
 0x245   : > { %v1013_v5 = vadd.f32 1.0, %v3206_v4 }
 0x246   : > { %v3208_v6 = vpop.eup %3207 }
 0x247   : > { %v1012_v7 = vadd.f32 1.0, %v3208_v6  ;;  %3213 = vrcp.f32 %v1013_v5  ;;  %v1428_v5 = vld [vmem:[#allocation3] sm:$0xff] }
 0x248   : > { %v3210_v8 = vpop.eup %3209 }
 0x249   : > { %3215 = vrcp.f32 %v1012_v7  ;;  %v1015_v9 = vadd.f32 1.0, %v3210_v8  ;;  %v2877_v7 = vld [vmem:[%s701_s9] ss:$0 sm:$0xff]  ;;  %s3293_s9 = smov 64  }
 0x24a   : > { %v3212_v10 = vpop.eup %3211 }
 0x24b   : > { %3217 = vrcp.f32 %v1015_v9  ;;  %v1014_v11 = vadd.f32 1.0, %v3212_v10 }
 0x24d   : > { %3219 = vrcp.f32 %v1014_v11 }
 0x254   : > { %v3214_v12 = vpop.eup %3213 }
 0x255   : > { %v1025_v16 = vmul.f32 %v3214_v12, %v987_v57  ;;  %v1435_v57 = vld [vmem:[%s3446_s7] sm:$0xff]  ;;  %s3298_s7 = smov 112  }
 0x256   : > { %v3216_v13 = vpop.eup %3215 }
 0x257   : > { %v1024_v14 = vmul.f32 %v3216_v13, %v982_v60 }
 0x258   : > { %v3218_v15 = vpop.eup %3217 }
 0x259   : > { %v1027_v17 = vmul.f32 %v3218_v15, %v997_v63  ;;  %3044 = vmatprep.mubr.msk.f32.mxu0 %vm902_vm10, %v1024_v14 }
 0x25a   : > { %v3220_v18 = vpop.eup %3219  ;;  %3045 = vmatmul.mubr.msk.f32.vlgmr.msra.gmra.mxu0 %vm902_vm10, %v1025_v16 }
 0x25b   : > { %v1026_v19 = vmul.f32 %v3220_v18, %v992_v2  ;;  %3050 = vmatprep.subr.mxu1 %v1027_v17  ;;  %v1429_v2 = vld [vmem:[#allocation3 + $0x8] sm:$0xff] }
 0x25c   : > { %3051 = vmatpush3.msra.mxu1 %v1027_v17 }
 0x25d   : > { %3047 = vmatprep.mubr.msk.f32.mxu0 %vm902_vm10, %v1026_v19  ;;  %3052 = vmatprep.subr.mxu1 %v1026_v19 }
 0x25e   : > { %3048 = vmatmul.mubr.msk.f32.gmra.mxu0 %vm902_vm10, %v1027_v17  ;;  %3053 = vmatpush3.msra.mxu1 %v1026_v19 }
 0x25f   : > { %3054 = vmatprep.subr.mxu1 %v1025_v16  ;;  %3069 = vmatprep.mubr.msk.f32.mxu0 %vm902_vm10, %v1160_v51 }
 0x260   : > { %3055 = vmatpush3.msra.mxu1 %v1025_v16 }
 0x261   : > { %3056 = vmatprep.subr.mxu1 %v1024_v14 }
 0x262   : > { %3057 = vmatpush3.msra.mxu1 %v1024_v14 }
 0x263   : > { %3059 = vmatmul.mubr.msk.f32.vlgmr.msra.gmra.mxu1 %vm902_vm10, %v1161_v20  ;;  %3072 = vmatprep.subr.mxu1 %v1337_v21 }
 0x264   : > { %3073 = vmatpush3.msra.mxu1 %v1337_v21 }
 0x265   : > { %3074 = vmatprep.subr.mxu1 %v1336_v22 }
 0x266   : > { %3075 = vmatpush3.msra.mxu1 %v1336_v22 }
 0x267   : > { %3076 = vmatprep.subr.mxu1 %v1335_v23 }
 0x268   : > { %3077 = vmatpush3.msra.mxu1 %v1335_v23 }
 0x269   : > { %3078 = vmatprep.subr.mxu1 %v1334_v24 }
 0x26a   : > { %3079 = vmatpush3.msra.mxu1 %v1334_v24 }
 0x31a   : > { %v3046_v28 = vpop.f32.mrf.mxu0 }
 0x31b   : > { %v1123_v29 = vadd.f32 %v3046_v28, %v2865_v27 }
 0x31c   : > { %v1117_v30 = vpop.f32.mrf.mxu0 }
 0x31d   : > { %1143 = vperm.xlu0 %3203, %v1123_v29   ;;  %v1118_v40 = vadd.f32 %v2865_v27, %v1117_v30 }
 0x31e   : > { %v3049_v31 = vpop.f32.mrf.mxu0 }
 0x31f   : > { %v1133_v33 = vadd.f32 %v3049_v31, %v2865_v27 }
 0x320   : > { %v1127_v34 = vpop.f32.mrf.mxu0 }
 0x321   : > { %1153 = vperm.xlu1 %3204, %v1133_v33   ;;  %v1128_v35 = vadd.f32 %v2865_v27, %v1127_v34 }
 0x323   : > { %v3060_v36 = vpop.f32.mrf.mxu1 }
 0x324   : > { %v1331_v41 = vmul.f32 %v3060_v36, %v1328_v37 }
 0x325   : > { %v1234_v38 = vpop.f32.mrf.mxu1  ;;  %1148 = vperm.xlu1 %3204, %v1128_v35  }
 0x326   : > { %v1330_v39 = vmul.f32 %v3560_v32, %v1234_v38 }
 0x328   : > { %3080 = vmatprep.mubr.msk.f32.mxu1 %vm902_vm10, %v1330_v39 }
 0x329   : > { %3081 = vmatmul.mubr.msk.f32.vlgmr.msra.gmra.mxu1 %vm902_vm10, %v1331_v41  ;;  %1138 = vperm.xlu1 %3204, %v1118_v40  }
 0x398   : > { %v1144_v47 = vpop.permute.xlu0 %1143 }
 0x399   : > { %v1157_v51 = vmul.f32 %v1144_v47, %v782_v46 }
 0x39c   : > { %v1154_v43 = vpop.permute.xlu1 %1153 }
 0x39d   : > { %v1159_v44 = vmul.f32 %v1154_v43, %v784_v42 }
 0x39f   : > { %3061 = vmatprep.subr.mxu0 %v1159_v44 }
 0x3a0   : > { %3062 = vmatpush3.msra.mxu0 %v1159_v44  ;;  %v1149_v48 = vpop.permute.xlu1 %1148  ;;  %v1527_v44 = vld [vmem:[%s3455_s27] sm:$0xff] }
 0x3a1   : > { %v1158_v49 = vmul.f32 %v1149_v48, %v783_v45 }
 0x3a3   : > { %3063 = vmatprep.subr.mxu0 %v1158_v49 }
 0x3a4   : > { %3064 = vmatpush3.msra.mxu0 %v1158_v49  ;;  %v1139_v52 = vpop.permute.xlu1 %1138 }
 0x3a5   : > { %v1156_v53 = vmul.f32 %v1139_v52, %v781_v50  ;;  %3065 = vmatprep.subr.mxu0 %v1157_v51 }
 0x3a6   : > { %3066 = vmatpush3.msra.mxu0 %v1157_v51 }
 0x3a7   : > { %3067 = vmatprep.subr.mxu0 %v1156_v53 }
 0x3a8   : > { %3068 = vmatpush3.msra.mxu0 %v1156_v53 }
 0x3a9   : > { %3070 = vmatmul.mubr.msk.f32.vlgmr.msra.gmra.mxu0 %vm902_vm10, %v1161_v20  ;;  %3083 = vmatprep.subr.mxu0 %v1438_v54 }
 0x3aa   : > { %3084 = vmatpush3.msra.mxu0 %v1438_v54 }
 0x3ab   : > { %3085 = vmatprep.subr.mxu0 %v1437_v55 }
 0x3ac   : > { %3086 = vmatpush3.msra.mxu0 %v1437_v55 }
 0x3ad   : > { %3087 = vmatprep.subr.mxu0 %v1436_v56 }
 0x3ae   : > { %3088 = vmatpush3.msra.mxu0 %v1436_v56 }
 0x3af   : > { %3089 = vmatprep.subr.mxu0 %v1435_v57 }
 0x3b0   : > { %3090 = vmatpush3.msra.mxu0 %v1435_v57 }
 0x3e9   : > { %v3082_v59 = vpop.f32.mrf.mxu1 }
 0x3ea   : > { %v1423_v60 = vadd.f32 %v3082_v59, %v2874_v58 }
 0x3eb   : > { %v1417_v61 = vpop.f32.mrf.mxu1 }
 0x3ec   : > { %v1418_v62 = vadd.f32 %v2874_v58, %v1417_v61  ;;  %v3591_v0 = vadd.f32 %v1423_v60, %v3497_v25 }
 0x3ee   : > { %v3588_v63 = vadd.f32 %v1418_v62, %v3499_v26 }
 0x3f0   : > { %3091 = vmatprep.mubr.msk.f32.mxu0 %vm902_vm10, %v3588_v63 }
 0x3f1   : > { %3092 = vmatmul.mubr.msk.f32.vlgmr.msra.gmra.mxu0 %vm902_vm10, %v3591_v0 }
 0x469   : > { %v3071_v1 = vpop.f32.mrf.mxu0 }
 0x46a   : > { %v1333_v3 = vmul.f32 %v3071_v1, %v1328_v37 }
 0x46b   : > { %v1309_v4 = vpop.f32.mrf.mxu0 }
 0x46c   : > { %v1431_v6 = vadd.f32 %v1429_v2, %v1333_v3  ;;  %v1332_v26 = vmul.f32 %v3560_v32, %v1309_v4 }
 0x46e   : > { %1434 = vst.msk [vmem:[#allocation3 + $0x8] sm:$0xff] %vm1432_vm11, %v1431_v6  ;;  %2682 = vst.msk [vmem:[%s3773_s20 + $0x8] sm:$0xff] %vm1432_vm11, %v1431_v6  ;;  %v1430_v25 = vadd.f32 %v1428_v5, %v1332_v26  ;;  %v1528_v5 = vld [vmem:[%s3455_s27 + $0x8] sm:$0xff] }
 0x470   : > { %1433 = vst.msk [vmem:[#allocation3] sm:$0xff] %vm1432_vm11, %v1430_v25  ;;  %2681 = vst.msk [vmem:[%s3773_s20] sm:$0xff] %vm1432_vm11, %v1430_v25 }
 0x4b1   : > { %v3093_v8 = vpop.f32.mrf.mxu0 }
 0x4b2   : > { %v3609_v9 = vadd.f32 %v3093_v8, %v2877_v7 }
 0x4b3   : > { %v1518_v10 = vpop.f32.mrf.mxu0 }
 0x4b4   : > { %v3611_v11 = vadd.f32 %v2877_v7, %v1518_v10  ;;  %1535 = vrot.lane.b32.xlu0 %v3609_v9, %s3292_s21 }
 0x4b6   : > { %1533 = vrot.lane.b32.xlu1 %v3611_v11, %s3292_s21  ;;  %3098 = vmatprep.mubr.msk.f32.mxu1 %vm1537_vm12, %v3611_v11  ;;  %s3303_s21 = smov [#allocation6]  }
 0x526   : > { %v1536_v12 = vpop.permute.xlu0 %1535 }
 0x527   : > { %3094 = vmatprep.subr.msk.mxu1 %vm1537_vm12, %v1536_v12 }
 0x528   : > { %3095 = vmatpush3.xpose.msk.msra.mxu1 %vm1537_vm12, %v1536_v12  ;;  %v1534_v13 = vpop.permute.xlu1 %1533 }
 0x529   : > { %3096 = vmatprep.subr.msk.mxu1 %vm1537_vm12, %v1534_v13 }
 0x52c   : > { %3097 = vmatpush3.xpose.msk.msra.mxu1 %vm1537_vm12, %v1534_v13 }
 0x52f   : > { %3099 = vmatmul.mubr.msk.f32.vlgmr.msra.gmra.mxu1 %vm1537_vm12, %v3609_v9 }
 0x5ef   : > { %v3100_v14 = vpop.f32.mrf.mxu1 }
 0x5f0   : > { %v1622_v15 = vmul.f32 0.35355338, %v3100_v14 }
 0x5f1   : > { %v1612_v16 = vpop.f32.mrf.mxu1 }
 0x5f2   : > { %v1621_v17 = vmul.f32 0.35355338, %v1612_v16  ;;  %v1626_v18 = vsel %vm789_vm9, %v1622_v15, -inf }
 0x5f3   : > { %1627 = vmax.xlane.f32.xlu1 %v1626_v18 }
 0x5f4   : > { %v1623_v19 = vsel %vm789_vm9, %v1621_v17, -inf }
 0x5f5   : > { %1624 = vmax.xlane.f32.xlu0 %v1623_v19 }
 0x604   : > { %1647 = vrot.lane.b32.xlu1 %v3609_v9, %s3293_s9 }
 0x608   : > { %1738 = vrot.lane.b32.xlu1 %v3609_v9, %s3294_s3 }
 0x60c   : > { %1736 = vrot.lane.b32.xlu1 %v3611_v11, %s3294_s3 }
 0x610   : > { %1734 = vrot.lane.b32.xlu1 %v3609_v9, %s3295_s30 }
 0x67c   : > { %v1628_v20 = vpop.xlane.xlu1 %1627 }
 0x67d   : > { %v1630_v21 = vsub.f32 %v1622_v15, %v1628_v20 }
 0x67e   : > { %v1625_v22 = vpop.xlane.xlu0 %1624 }
 0x67f   : > { %v1633_v23 = vmul.f32 1.442695, %v1630_v21  ;;  %v1629_v24 = vsub.f32 %v1621_v17, %v1625_v22 }
 0x680   : > { %v1648_v27 = vpop.permute.xlu1 %1647 }
 0x681   : > { %3221 = vpow2.f32 %v1633_v23  ;;  %v1631_v28 = vmul.f32 1.442695, %v1629_v24  ;;  %3101 = vmatprep.subr.mxu0 %v1648_v27 }
 0x682   : > { %3102 = vmatpush3.msra.mxu0 %v1648_v27 }
 0x683   : > { %3223 = vpow2.f32 %v1631_v28 }
 0x684   : > { %v1739_v36 = vpop.permute.xlu1 %1738 }
 0x688   : > { %v1737_v42 = vpop.permute.xlu1 %1736 }
 0x68c   : > { %v1735_v43 = vpop.permute.xlu1 %1734 }
 0x68e   : > { %v3222_v29 = vpop.eup %3221 }
 0x68f   : > { %v1638_v30 = vsel %vm789_vm9, %v3222_v29, 0.0 }
 0x690   : > { %v3224_v31 = vpop.eup %3223  ;;  %1639 = vadd.xlane.f32.xlu0 %v1638_v30 }
 0x691   : > { %v1635_v32 = vsel %vm789_vm9, %v3224_v31, 0.0 }
 0x694   : > { %1636 = vadd.xlane.f32.xlu0 %v1635_v32 }
 0x6aa   : > { %1645 = vrot.lane.b32.xlu0 %v3611_v11, %s3293_s9  ;;  %s2689_s9 = sshll.u32 %s3303_s21, 4  ;;  %s2690_s9 = int_to_ptr.vmem [resolvable:$true] %s2689_s9 }
 0x6ab   : > { %p3260_p9 = scmp.lt.s32.totalorder %s2690_s9, %s2690_s9 }
 0x6ae   : > { %1732 = vrot.lane.b32.xlu0 %v3611_v11, %s3295_s30 }
 0x719   : > { %v1640_v33 = vpop.xlane.xlu0 %1639 }
 0x71a   : > { %3225 = vrcp.f32 %v1640_v33 }
 0x71d   : > { %v1637_v34 = vpop.xlane.xlu0 %1636 }
 0x71e   : > { %3227 = vrcp.f32 %v1637_v34 }
 0x721   : > { %v1646_v35 = vpop.permute.xlu0 %1645 }
 0x722   : > { %3103 = vmatprep.subr.mxu0 %v1646_v35 }
 0x723   : > { %3104 = vmatpush3.msra.mxu0 %v1646_v35 }
 0x724   : > { %3108 = vmatprep.subr.msk.mxu0 %vm1537_vm12, %v1739_v36 }
 0x725   : > { %v1733_v41 = vpop.permute.xlu0 %1732 }
 0x727   : > { %v3226_v37 = vpop.eup %3225 }
 0x728   : > { %v1644_v40 = vmul.f32 %v3226_v37, %v3222_v29 }
 0x72b   : > { %v3228_v38 = vpop.eup %3227 }
 0x72c   : > { %v1643_v39 = vmul.f32 %v3228_v38, %v3224_v31 }
 0x72e   : > { %3105 = vmatprep.mubr.msk.f32.mxu0 %vm789_vm9, %v1643_v39 }
 0x72f   : > { %3106 = vmatmul.mubr.msk.f32.vlgmr.msra.gmra.mxu0 %vm789_vm9, %v1644_v40 }
 0x730   : > { %3109 = vmatpush3.xpose.msk.msra.mxu0 %vm1537_vm12, %v1739_v36  ;;  %3112 = vmatprep.mubr.msk.f32.mxu0 %vm1537_vm12, %v1733_v41 }
 0x731   : > { %3110 = vmatprep.subr.msk.mxu0 %vm1537_vm12, %v1737_v42 }
 0x734   : > { %3111 = vmatpush3.xpose.msk.msra.mxu0 %vm1537_vm12, %v1737_v42 }
 0x735   : > { %3127 = vmatprep.subr.mxu0 %v1527_v44 }
 0x737   : > { %3113 = vmatmul.mubr.msk.f32.vlgmr.msra.gmra.mxu0 %vm1537_vm12, %v1735_v43 }
 0x738   : > { %3128 = vmatpush3.msra.mxu0 %v1527_v44 }
 0x7ef   : > { %v3107_v45 = vpop.f32.mrf.mxu0 }
 0x7f1   : > { %v1723_v46 = vpop.f32.mrf.mxu0 }
 0x7f2   : > { %3129 = vmatprep.mubr.msk.f32.mxu0 %vm1537_vm12, %v1723_v46 }
 0x7f3   : > { %3130 = vmatmul.mubr.msk.f32.vlgmr.msra.gmra.mxu0 %vm1537_vm12, %v3107_v45 }
 0x7f7   : > { %v3114_v47 = vpop.f32.mrf.mxu0 }
 0x7f8   : > { %v1824_v48 = vmul.f32 0.35355338, %v3114_v47 }
 0x7f9   : > { %v1814_v49 = vpop.f32.mrf.mxu0 }
 0x7fa   : > { %v1823_v50 = vmul.f32 0.35355338, %v1814_v49  ;;  %v1828_v51 = vsel %vm789_vm9, %v1824_v48, -inf }
 0x7fb   : > { %1829 = vmax.xlane.f32.xlu1 %v1828_v51 }
 0x7fc   : > { %v1825_v52 = vsel %vm789_vm9, %v1823_v50, -inf }
 0x7fd   : > { %1826 = vmax.xlane.f32.xlu0 %v1825_v52 }
 0x80c   : > { %1849 = vrot.lane.b32.xlu1 %v3609_v9, %s3296_s22 }
 0x810   : > { %2102 = vrot.lane.b32.xlu1 %v3609_v9, %s3297_s2 }
 0x814   : > { %2100 = vrot.lane.b32.xlu1 %v3611_v11, %s3297_s2 }
 0x818   : > { %2098 = vrot.lane.b32.xlu1 %v3609_v9, %s3298_s7 }
 0x81c   : > { %2385 = vrot.lane.b32.xlu1 %v3611_v11, %s3299_s24 }
 0x820   : > { %2383 = vrot.lane.b32.xlu1 %v3609_v9, %s3300_s17 }
 0x884   : > { %v1830_v53 = vpop.xlane.xlu1 %1829 }
 0x885   : > { %v1832_v54 = vsub.f32 %v1824_v48, %v1830_v53 }
 0x886   : > { %v1827_v55 = vpop.xlane.xlu0 %1826 }
 0x887   : > { %v1835_v56 = vmul.f32 1.442695, %v1832_v54  ;;  %v1831_v57 = vsub.f32 %v1823_v50, %v1827_v55  ;;  %v1529_v55 = vld [vmem:[%s3455_s27 + $0x10] sm:$0xff] }
 0x888   : > { %v1850_v58 = vpop.permute.xlu1 %1849 }
 0x889   : > { %3229 = vpow2.f32 %v1835_v56  ;;  %v1833_v59 = vmul.f32 1.442695, %v1831_v57  ;;  %3115 = vmatprep.subr.mxu1 %v1850_v58 }
 0x88a   : > { %3116 = vmatpush3.msra.mxu1 %v1850_v58 }
 0x88b   : > { %3231 = vpow2.f32 %v1833_v59 }
 0x88c   : > { %v2103_v8 = vpop.permute.xlu1 %2102 }
 0x890   : > { %v2101_v13 = vpop.permute.xlu1 %2100 }
 0x894   : > { %v2099_v16 = vpop.permute.xlu1 %2098 }
 0x896   : > { %v3230_v60 = vpop.eup %3229 }
 0x897   : > { %v1840_v61 = vsel %vm789_vm9, %v3230_v60, 0.0 }
 0x898   : > { %v3232_v62 = vpop.eup %3231  ;;  %1841 = vadd.xlane.f32.xlu0 %v1840_v61  ;;  %v2386_v18 = vpop.permute.xlu1 %2385 }
 0x899   : > { %v1837_v1 = vsel %vm789_vm9, %v3232_v62, 0.0 }
 0x89c   : > { %1838 = vadd.xlane.f32.xlu0 %v1837_v1  ;;  %v2384_v19 = vpop.permute.xlu1 %2383 }
 0x8b2   : > { %1847 = vrot.lane.b32.xlu0 %v3611_v11, %s3296_s22 }
 0x8b6   : > { %2096 = vrot.lane.b32.xlu0 %v3611_v11, %s3298_s7 }
 0x8ba   : > { %2387 = vrot.lane.b32.xlu0 %v3609_v9, %s3299_s24 }
 0x8be   : > { %2381 = vrot.lane.b32.xlu0 %v3611_v11, %s3300_s17 }
 0x921   : > { %v1842_v2 = vpop.xlane.xlu0 %1841 }
 0x922   : > { %3233 = vrcp.f32 %v1842_v2 }
 0x925   : > { %v1839_v3 = vpop.xlane.xlu0 %1838 }
 0x926   : > { %3235 = vrcp.f32 %v1839_v3 }
 0x929   : > { %v1848_v4 = vpop.permute.xlu0 %1847 }
 0x92a   : > { %3117 = vmatprep.subr.mxu1 %v1848_v4 }
 0x92b   : > { %3118 = vmatpush3.msra.mxu1 %v1848_v4  ;;  %v3131_v4 = vpop.f32.mrf.mxu0 }
 0x92c   : > { %3122 = vmatprep.subr.mxu1 %v1528_v5 }
 0x92d   : > { %v2097_v10 = vpop.permute.xlu0 %2096 }
 0x92f   : > { %v3234_v6 = vpop.eup %3233 }
 0x930   : > { %v1846_v7 = vmul.f32 %v3234_v6, %v3230_v60 }
 0x931   : > { %v2388_v15 = vpop.permute.xlu0 %2387 }
 0x933   : > { %v3236_v26 = vpop.eup %3235 }
 0x934   : > { %v1845_v25 = vmul.f32 %v3236_v26, %v3232_v62 }
 0x935   : > { %v2382_v17 = vpop.permute.xlu0 %2381 }
 0x936   : > { %3119 = vmatprep.mubr.msk.f32.mxu1 %vm789_vm9, %v1845_v25 }
 0x937   : > { %3120 = vmatmul.mubr.msk.f32.vlgmr.msra.gmra.mxu1 %vm789_vm9, %v1846_v7 }
 0x938   : > { %3123 = vmatpush3.msra.mxu1 %v1528_v5  ;;  %v2087_v5 = vpop.f32.mrf.mxu0 }
 0x939   : > { %3132 = vmatprep.subr.msk.mxu1 %vm1537_vm12, %v2103_v8 }
 0x9f7   : > { %v3121_v12 = vpop.f32.mrf.mxu1 }
 0x9f9   : > { %v1925_v14 = vpop.f32.mrf.mxu1 }
 0x9fa   : > { %3124 = vmatprep.mubr.msk.f32.mxu1 %vm1537_vm12, %v1925_v14 }
 0x9fb   : > { %3125 = vmatmul.mubr.msk.f32.vlgmr.msra.gmra.mxu1 %vm1537_vm12, %v3121_v12 }
 0x9fc   : > { %3133 = vmatpush3.xpose.msk.msra.mxu1 %vm1537_vm12, %v2103_v8  ;;  %3136 = vmatprep.mubr.msk.f32.mxu1 %vm1537_vm12, %v2097_v10 }
 0x9fd   : > { %3134 = vmatprep.subr.msk.mxu1 %vm1537_vm12, %v2101_v13 }
 0xa00   : > { %3135 = vmatpush3.xpose.msk.msra.mxu1 %vm1537_vm12, %v2101_v13  ;;  %v1530_v13 = vld [vmem:[%s3455_s27 + $0x18] sm:$0xff] }
 0xa01   : > { %3151 = vmatprep.subr.msk.mxu1 %vm1537_vm12, %v2388_v15 }
 0xa03   : > { %3137 = vmatmul.mubr.msk.f32.vlgmr.msra.gmra.mxu1 %vm1537_vm12, %v2099_v16 }
 0xa04   : > { %3152 = vmatpush3.xpose.msk.msra.mxu1 %vm1537_vm12, %v2388_v15  ;;  %3155 = vmatprep.mubr.msk.f32.mxu1 %vm1537_vm12, %v2382_v17 }
 0xa05   : > { %3153 = vmatprep.subr.msk.mxu1 %vm1537_vm12, %v2386_v18 }
 0xa08   : > { %3154 = vmatpush3.xpose.msk.msra.mxu1 %vm1537_vm12, %v2386_v18 }
 0xa0b   : > { %3156 = vmatmul.mubr.msk.f32.vlgmr.msra.gmra.mxu1 %vm1537_vm12, %v2384_v19 }
 0xabb   : > { %v3675_v20 = vpop.f32.mrf.mxu1 }
 0xabc   : > { %v2093_v14 = vadd.f32 %v3131_v4, %v3675_v20  ;;  %v2912_v20 = vld [vmem:[%s709_s11] ss:$0 sm:$0xff]  ;;  %s3253_s11 = scalar_lea.vmem %s2690_s9, 256 }
 0xabd   : > { %v3677_v21 = vpop.f32.mrf.mxu1  ;;  %p3254_p6 = scmp.ne.s32.totalorder %s2690_s9, %s3253_s11  ;;  %p3261_p10 = scmp.lt.s32.totalorder %s3253_s11, %s3253_s11 }
 0xabe   : > { %v2088_v16 = vadd.f32 %v2087_v5, %v3677_v21 }
 0xabf   : > { %p3255_p7 = pnand %p3254_p6, %p3174_p5  ;;  %p3262_p11 = por %p3261_p10, %p3260_p9 }
 0xac1   : > { %p3256_p8 = pneg %p3255_p7 }
 0xac3   : > { %v3138_v22 = vpop.f32.mrf.mxu1  ;;  %p3263_p12 = pnand %p3262_p11, %p3256_p8 }
 0xac4   : > { %v2188_v23 = vmul.f32 0.35355338, %v3138_v22 }
 0xac5   : > { %v2178_v24 = vpop.f32.mrf.mxu1 }
 0xac6   : > { %v2187_v27 = vmul.f32 0.35355338, %v2178_v24  ;;  %v2192_v28 = vsel %vm789_vm9, %v2188_v23, -inf }
 0xac7   : > { %2193 = vmax.xlane.f32.xlu1 %v2192_v28 }
 0xac8   : > { %v2189_v29 = vsel %vm789_vm9, %v2187_v27, -inf }
 0xac9   : > { %2190 = vmax.xlane.f32.xlu0 %v2189_v29 }
 0xacb   : > { %v3157_v30 = vpop.f32.mrf.mxu1 }
 0xacc   : > { %v2473_v49 = vmul.f32 0.35355338, %v3157_v30 }
 0xacd   : > { %v2463_v31 = vpop.f32.mrf.mxu1 }
 0xace   : > { %v2472_v32 = vmul.f32 0.35355338, %v2463_v31  ;;  %v2477_v51 = vsel %vm789_vm9, %v2473_v49, -inf }
 0xad0   : > { %v2474_v33 = vsel %vm789_vm9, %v2472_v32, -inf }
 0xad8   : > { %2213 = vrot.lane.b32.xlu1 %v3609_v9, %s3301_s18 }
 0xafc   : > { %2475 = vmax.xlane.f32.xlu1 %v2474_v33 }
 0xb50   : > { %v2194_v34 = vpop.xlane.xlu1 %2193 }
 0xb51   : > { %v2196_v35 = vsub.f32 %v2188_v23, %v2194_v34 }
 0xb52   : > { %v2191_v36 = vpop.xlane.xlu0 %2190 }
 0xb53   : > { %v2199_v37 = vmul.f32 1.442695, %v2196_v35  ;;  %v2195_v38 = vsub.f32 %v2187_v27, %v2191_v36 }
 0xb54   : > { %v2214_v39 = vpop.permute.xlu1 %2213 }
 0xb55   : > { %3237 = vpow2.f32 %v2199_v37  ;;  %v2197_v40 = vmul.f32 1.442695, %v2195_v38  ;;  %3139 = vmatprep.subr.mxu0 %v2214_v39 }
 0xb56   : > { %3140 = vmatpush3.msra.mxu0 %v2214_v39 }
 0xb57   : > { %3239 = vpow2.f32 %v2197_v40 }
 0xb62   : > { %v3238_v41 = vpop.eup %3237 }
 0xb63   : > { %v2204_v42 = vsel %vm789_vm9, %v3238_v41, 0.0 }
 0xb64   : > { %v3240_v43 = vpop.eup %3239  ;;  %2205 = vadd.xlane.f32.xlu0 %v2204_v42 }
 0xb65   : > { %v2201_v44 = vsel %vm789_vm9, %v3240_v43, 0.0 }
 0xb68   : > { %2202 = vadd.xlane.f32.xlu0 %v2201_v44 }
 0xb7e   : > { %2211 = vrot.lane.b32.xlu0 %v3611_v11, %s3301_s18 }
 0xb85   : > { %v2476_v45 = vpop.xlane.xlu1 %2475 }
 0xb86   : > { %v2480_v46 = vsub.f32 %v2472_v32, %v2476_v45 }
 0xb88   : > { %v2482_v47 = vmul.f32 1.442695, %v2480_v46 }
 0xb8a   : > { %3241 = vpow2.f32 %v2482_v47 }
 0xb97   : > { %v3242_v48 = vpop.eup %3241 }
 0xb98   : > { %v2486_v50 = vsel %vm789_vm9, %v3242_v48, 0.0 }
 0xb99   : > { %2487 = vadd.xlane.f32.xlu1 %v2486_v50 }
 0xb9d   : > { %2478 = vmax.xlane.f32.xlu0 %v2477_v51 }
 0xbaa   : > { %2498 = vrot.lane.b32.xlu1 %v3609_v9, %s3302_s0 }
 0xbed   : > { %v2206_v52 = vpop.xlane.xlu0 %2205 }
 0xbee   : > { %3243 = vrcp.f32 %v2206_v52 }
 0xbf1   : > { %v2203_v53 = vpop.xlane.xlu0 %2202 }
 0xbf2   : > { %3245 = vrcp.f32 %v2203_v53 }
 0xbf5   : > { %v2212_v54 = vpop.permute.xlu0 %2211 }
 0xbf6   : > { %3141 = vmatprep.subr.mxu0 %v2212_v54 }
 0xbf7   : > { %3142 = vmatpush3.msra.mxu0 %v2212_v54 }
 0xbf8   : > { %3146 = vmatprep.subr.mxu0 %v1529_v55 }
 0xbfb   : > { %v3244_v56 = vpop.eup %3243 }
 0xbfc   : > { %v2210_v59 = vmul.f32 %v3244_v56, %v3238_v41 }
 0xbff   : > { %v3246_v57 = vpop.eup %3245 }
 0xc00   : > { %v2209_v58 = vmul.f32 %v3246_v57, %v3240_v43 }
 0xc02   : > { %3143 = vmatprep.mubr.msk.f32.mxu0 %vm789_vm9, %v2209_v58 }
 0xc03   : > { %3144 = vmatmul.mubr.msk.f32.vlgmr.msra.gmra.mxu0 %vm789_vm9, %v2210_v59 }
 0xc04   : > { %3147 = vmatpush3.msra.mxu0 %v1529_v55 }
 0xc22   : > { %v2488_v60 = vpop.xlane.xlu1 %2487 }
 0xc26   : > { %v2499_v9 = vpop.permute.xlu1 %2498  ;;  %v2479_v61 = vpop.xlane.xlu0 %2478 }
 0xc27   : > { %v2481_v62 = vsub.f32 %v2473_v49, %v2479_v61  ;;  %3158 = vmatprep.subr.mxu0 %v2499_v9 }
 0xc29   : > { %v2484_v1 = vmul.f32 1.442695, %v2481_v62 }
 0xc2b   : > { %3247 = vpow2.f32 %v2484_v1 }
 0xc2c   : > { %3249 = vrcp.f32 %v2488_v60 }
 0xc38   : > { %v3248_v2 = vpop.eup %3247 }
 0xc39   : > { %v2489_v3 = vsel %vm789_vm9, %v3248_v2, 0.0  ;;  %v3250_v6 = vpop.eup %3249 }
 0xc3a   : > { %2490 = vadd.xlane.f32.xlu0 %v2489_v3  ;;  %v2494_v8 = vmul.f32 %v3250_v6, %v3242_v48 }
 0xc50   : > { %2496 = vrot.lane.b32.xlu0 %v3611_v11, %s3302_s0 }
 0xcc3   : > { %v3145_v26 = vpop.f32.mrf.mxu0  ;;  %v2491_v25 = vpop.xlane.xlu0 %2490 }
 0xcc4   : > { %3251 = vrcp.f32 %v2491_v25 }
 0xcc5   : > { %v2289_v7 = vpop.f32.mrf.mxu0 }
 0xcc6   : > { %3148 = vmatprep.mubr.msk.f32.mxu0 %vm1537_vm12, %v2289_v7 }
 0xcc7   : > { %3149 = vmatmul.mubr.msk.f32.vlgmr.msra.gmra.mxu0 %vm1537_vm12, %v3145_v26  ;;  %v2497_v10 = vpop.permute.xlu0 %2496 }
 0xcc8   : > { %3159 = vmatpush3.msra.mxu0 %v2499_v9  ;;  %3162 = vmatprep.mubr.msk.f32.mxu0 %vm789_vm9, %v2494_v8 }
 0xcc9   : > { %3160 = vmatprep.subr.mxu0 %v2497_v10 }
 0xcca   : > { %3161 = vmatpush3.msra.mxu0 %v2497_v10 }
 0xccb   : > { %3165 = vmatprep.subr.mxu0 %v1530_v13 }
 0xcd1   : > { %v3252_v11 = vpop.eup %3251 }
 0xcd2   : > { %v2495_v12 = vmul.f32 %v3252_v11, %v3248_v2 }
 0xcd4   : > { %3163 = vmatmul.mubr.msk.f32.vlgmr.msra.gmra.mxu0 %vm789_vm9, %v2495_v12 }
 0xcd5   : > { %3166 = vmatpush3.msra.mxu0 %v1530_v13 }
 0xd87   : > { %v3150_v15 = vpop.f32.mrf.mxu0 }
 0xd88   : > { %v2380_v17 = vadd.f32 %v3150_v15, %v2093_v14 }
 0xd89   : > { %v2370_v18 = vpop.f32.mrf.mxu0 }
 0xd8a   : > { %v2379_v19 = vadd.f32 %v2370_v18, %v2088_v16 }
 0xd94   : > { %v3164_v22 = vpop.f32.mrf.mxu0 }
 0xd96   : > { %v2574_v23 = vpop.f32.mrf.mxu0 }
 0xd97   : > { %3167 = vmatprep.mubr.msk.f32.mxu0 %vm1537_vm12, %v2574_v23 }
 0xd98   : > { %3168 = vmatmul.mubr.msk.f32.vlgmr.msra.gmra.mxu0 %vm1537_vm12, %v3164_v22 }
 0xe58   : > { %v3169_v24 = vpop.f32.mrf.mxu0 }
 0xe59   : > { %v2665_v27 = vadd.f32 %v3169_v24, %v2380_v17 }
 0xe5a   : > { %v2655_v28 = vpop.f32.mrf.mxu0 }
 0xe5b   : > { %v2667_v21 = vadd.f32 %v2665_v27, %v3591_v0  ;;  %v2664_v29 = vadd.f32 %v2655_v28, %v2379_v19 }
 0xe5d   : > { %v2676_v30 = vadd.f32 %v2912_v20, %v2667_v21  ;;  %v2666_v31 = vadd.f32 %v2664_v29, %v3588_v63 }
 0xe5f   : > { %2678 = vst.msk [vmem:[#allocation2 + $0x8] sm:$0xff] %vm902_vm10, %v2676_v30  ;;  %2680 = vst.msk [vmem:[#allocation6 + $0x8] sm:$0xff] %vm902_vm10, %v2676_v30  ;;  %v2675_v32 = vadd.f32 %v2912_v20, %v2666_v31 }
 0xe61   : > { %2677 = vst.msk [vmem:[#allocation2] sm:$0xff] %vm902_vm10, %v2675_v32  ;;  %2679 = vst.msk [vmem:[#allocation6] sm:$0xff] %vm902_vm10, %v2675_v32 }
 0xe62   : > { %3266 = shalt.err (!%p3263_p12)
}
 0xe63   : > { %s3304_s29 = smov 128   ;;  %s3305_s3 = smov 8  }
 0xe64   : > { %s3774_s2 = sld [smem:[#allocation17_spill]] }
 0xe6a   : > { %3171 = dma.vmem_to_hbm [thread:$0]  (%p3174_p5), %s2690_s9, 256, %s3774_s2, [#allocation7], %s3304_s29, %s3304_s29, %s3305_s3  }
 0xe6b   : > { %3282 = dma.done.wait (%p3174_p5), [#allocation7], 256  }
 0xe6c   : > { %3284 = vsyncadd (%p3174_p5), [#allocation7], 4294967040 }
 0xe6d PF: > { %s3775_s7 = sld [smem:[#allocation9_spill]] }
 0xe73   : > { %s30_s27 = sadd.s32 1, %s3775_s7  }
 0xe74   : > { %p27_p13 = scmp.ge.s32.totalorder %s30_s27, 4  }
 0xe76   :  { %29 = sbr.rel (!%p27_p13) target bundleno = 11 (0xb), region = 154 }
 0xe7b   :  { %2711 = vsyncpa [#allocation7], 1 }
 0xe7c   :  { %2713 = vsyncpa [#allocation7 + $0x1], 1 }

</bundles_post_ra>
